<compile_context>
chip_gen: v6e
topology: v6e:2x2x1
jax: 0.10.0
libtpu: 0.0.40
codegen_flags: <defaults>
</compile_context>

<pallas_src>
import numpy as np
import jax
import jax.numpy as jnp
from jax import lax
from jax.experimental import pallas as pl
from jax.experimental.pallas import tpu as pltpu

N_EMBD = 64
N_HEAD = 8
HEAD_SIZE = N_EMBD // N_HEAD
LN_EPS = 1e-5
NEG_INF = -1e30


def _layer_norm(x, gamma, beta):
    mu = jnp.mean(x, axis=-1, keepdims=True)
    var = jnp.mean((x - mu) ** 2, axis=-1, keepdims=True)
    return (x - mu) * lax.rsqrt(var + LN_EPS) * gamma + beta


def block_kernel(x_ref, vec_ref, b1_ref, wqkv_ref, wproj_ref, w1_ref, w2_ref,
                 o_ref):
    x = x_ref[...]                                   # (T, C) f32
    T, C = x.shape

    vec = vec_ref[...]                               # (6, C) f32, packed vectors
    ln1_g, ln1_b = vec[0:1, :], vec[1:2, :]
    ln2_g, ln2_b = vec[2:3, :], vec[3:4, :]
    bproj, b2 = vec[4:5, :], vec[5:6, :]

    # ---- LayerNorm 1 (f32) + fused QKV projection (bf16 in, f32 accumulate) ----
    h = _layer_norm(x, ln1_g, ln1_b)
    qkv = jnp.dot(h.astype(jnp.bfloat16), wqkv_ref[...],
                  preferred_element_type=jnp.float32)          # (T, 3C)

    # Head-major stacks (H, T, D): static lane slices + leading-axis stack
    # (no lane concatenate, no explicit K transposes downstream).
    q = jnp.stack([qkv[:, i * HEAD_SIZE:(i + 1) * HEAD_SIZE]
                   for i in range(N_HEAD)], axis=0)
    k = jnp.stack([qkv[:, C + i * HEAD_SIZE:C + (i + 1) * HEAD_SIZE]
                   for i in range(N_HEAD)], axis=0)
    v = jnp.stack([qkv[:, 2 * C + i * HEAD_SIZE:2 * C + (i + 1) * HEAD_SIZE]
                   for i in range(N_HEAD)], axis=0)

    scale = float(C) ** -0.5                         # C == n_embd, matches PyTorch
    s = jnp.einsum('htd,hsd->hts',
                   q.astype(jnp.bfloat16), k.astype(jnp.bfloat16),
                   preferred_element_type=jnp.float32) * scale   # (H, T, T)

    row = lax.broadcasted_iota(jnp.int32, (N_HEAD, T, T), 1)
    col = lax.broadcasted_iota(jnp.int32, (N_HEAD, T, T), 2)
    s = jnp.where(col <= row, s, NEG_INF)            # causal mask, finite sentinel

    m = jnp.max(s, axis=-1, keepdims=True)
    p = jnp.exp(s - m)                               # f32 exp (EUP)
    denom = jnp.sum(p, axis=-1, keepdims=True)
    p = p * pl.reciprocal(denom, approx=True)        # softmax (dropout = identity)

    ctx = jnp.einsum('hts,hsd->htd',
                     p.astype(jnp.bfloat16), v.astype(jnp.bfloat16),
                     preferred_element_type=jnp.float32)         # (H, T, D)

    # Output projection folded per head: sum_h ctx[h] @ Wproj[h] == concat_h(ctx) @ Wproj
    proj = jnp.einsum('htd,hdc->htc',
                      ctx.astype(jnp.bfloat16), wproj_ref[...],
                      preferred_element_type=jnp.float32)        # (H, T, C)
    sa = jnp.sum(proj, axis=0) + bproj
    x = x + sa                                       # residual 1

    # ---- LayerNorm 2 + feed-forward ----
    h2 = _layer_norm(x, ln2_g, ln2_b)
    ff = jnp.dot(h2.astype(jnp.bfloat16), w1_ref[...],
                 preferred_element_type=jnp.float32) + b1_ref[...]
    ff = jnp.maximum(ff, 0.0)                        # ReLU
    ff = jnp.dot(ff.astype(jnp.bfloat16), w2_ref[...],
                 preferred_element_type=jnp.float32) + b2

    o_ref[...] = x + ff                              # residual 2


def pack_params(params):
    (ln1_g, ln1_b, wq, wk, wv, wproj, bproj, ln2_g, ln2_b, w1, b1, w2, b2) = params
    vec = jnp.concatenate([ln1_g, ln1_b, ln2_g, ln2_b, bproj, b2], axis=0)  # (6, C)
    wqkv = jnp.concatenate([wq, wk, wv], axis=1).astype(jnp.bfloat16)       # (C, 3C)
    wproj_h = wproj.reshape(N_HEAD, HEAD_SIZE, N_EMBD).astype(jnp.bfloat16)  # (H, D, C)
    return (vec, b1, wqkv, wproj_h,
            w1.astype(jnp.bfloat16), w2.astype(jnp.bfloat16))


def transformer_block(x, params):
    B, T, C = x.shape
    vec, b1, wqkv, wproj_h, w1, w2 = pack_params(params)

    x_spec = pl.BlockSpec((None, T, C), lambda b: (b, 0, 0))

    def full_spec(p):
        nd = p.ndim
        return pl.BlockSpec(p.shape, lambda b, _nd=nd: (0,) * _nd)

    # TODO(synk): for realistic T (~500) add a second parallel grid axis over
    # query tiles (flash-style online softmax + causal tile skipping) so both
    # v7x TensorCores stay busy even for B=1; unnecessary at these small shapes.
    return pl.pallas_call(
        block_kernel,
        out_shape=jax.ShapeDtypeStruct((B, T, C), x.dtype),
        grid_spec=pltpu.PrefetchScalarGridSpec(
            num_scalar_prefetch=0,
            grid=(B,),
            in_specs=[x_spec, full_spec(vec), full_spec(b1), full_spec(wqkv),
                      full_spec(wproj_h), full_spec(w1), full_spec(w2)],
            out_specs=x_spec,
        ),
        compiler_params=pltpu.CompilerParams(
            dimension_semantics=("parallel",)),
    )(x, vec, b1, wqkv, wproj_h, w1, w2)


def init_params(key):
    ks = jax.random.split(key, 9)
    s = 0.02
    ln1_g = jnp.ones((1, N_EMBD), jnp.float32)
    ln1_b = jnp.zeros((1, N_EMBD), jnp.float32)
    ln2_g = jnp.ones((1, N_EMBD), jnp.float32)
    ln2_b = jnp.zeros((1, N_EMBD), jnp.float32)
    # per-head (C, head_size) weights concatenated along output dim -> (C, C)
    wq = jax.random.normal(ks[0], (N_EMBD, N_EMBD), jnp.float32) * s
    wk = jax.random.normal(ks[1], (N_EMBD, N_EMBD), jnp.float32) * s
    wv = jax.random.normal(ks[2], (N_EMBD, N_EMBD), jnp.float32) * s
    wproj = jax.random.normal(ks[3], (N_EMBD, N_EMBD), jnp.float32) * s
    bproj = jax.random.normal(ks[4], (1, N_EMBD), jnp.float32) * s
    w1 = jax.random.normal(ks[5], (N_EMBD, 4 * N_EMBD), jnp.float32) * s
    b1 = jax.random.normal(ks[6], (1, 4 * N_EMBD), jnp.float32) * s
    w2 = jax.random.normal(ks[7], (4 * N_EMBD, N_EMBD), jnp.float32) * s
    b2 = jax.random.normal(ks[8], (1, N_EMBD), jnp.float32) * s
    return (ln1_g, ln1_b, wq, wk, wv, wproj, bproj, ln2_g, ln2_b, w1, b1, w2, b2)


def ref_block(x, params):
    (ln1_g, ln1_b, wq, wk, wv, wproj, bproj, ln2_g, ln2_b, w1, b1, w2, b2) = params
    B, T, C = x.shape

    def ln(z, g, b):
        mu = z.mean(-1, keepdims=True)
        var = ((z - mu) ** 2).mean(-1, keepdims=True)
        return (z - mu) / jnp.sqrt(var + LN_EPS) * g + b

    h = ln(x, ln1_g, ln1_b)
    q = (h @ wq).reshape(B, T, N_HEAD, HEAD_SIZE).transpose(0, 2, 1, 3)
    k = (h @ wk).reshape(B, T, N_HEAD, HEAD_SIZE).transpose(0, 2, 1, 3)
    v = (h @ wv).reshape(B, T, N_HEAD, HEAD_SIZE).transpose(0, 2, 1, 3)
    s = jnp.einsum("bhtd,bhsd->bhts", q, k) * (C ** -0.5)
    mask = jnp.tril(jnp.ones((T, T), bool))
    s = jnp.where(mask, s, -jnp.inf)
    p = jax.nn.softmax(s, axis=-1)
    o = jnp.einsum("bhts,bhsd->bhtd", p, v).transpose(0, 2, 1, 3).reshape(B, T, C)
    x = x + o @ wproj + bproj
    h2 = ln(x, ln2_g, ln2_b)
    ff = jnp.maximum(h2 @ w1 + b1, 0.0) @ w2 + b2
    return x + ff


if __name__ == "__main__":
    key = jax.random.PRNGKey(0)
    kx, kp = jax.random.split(key)
    B, T = 2, 8                                 # T <= block_size (500)
    x = jax.random.normal(kx, (B, T, N_EMBD), jnp.float32)
    params = init_params(kp)

    out = transformer_block(x, params)
    out = jax.block_until_ready(out)

    ref = ref_block(x, params)
    # bf16 MXU inputs (f32 accumulation) -> relaxed tolerance vs. the f32 reference
    np.testing.assert_allclose(np.asarray(out), np.asarray(ref), atol=2e-2, rtol=2e-2)
    print("KERNEL_OK")
</pallas_src>

<mosaic_0001>
module attributes {stable_mosaic.version = 11 : i64} {
  func.func @block_kernel(%arg0: i32, %arg1: memref<1x8x64xf32, #tpu.memory_space<vmem>>, %arg2: memref<6x64xf32, #tpu.memory_space<vmem>>, %arg3: memref<1x256xf32, #tpu.memory_space<vmem>>, %arg4: memref<64x192xbf16, #tpu.memory_space<vmem>>, %arg5: memref<8x8x64xbf16, #tpu.memory_space<vmem>>, %arg6: memref<64x256xbf16, #tpu.memory_space<vmem>>, %arg7: memref<256x64xbf16, #tpu.memory_space<vmem>>, %arg8: memref<1x8x64xf32, #tpu.memory_space<vmem>>) attributes {dimension_semantics = [#tpu.dimension_semantics<parallel>], iteration_bounds = array<i64: 2>, scalar_prefetch = 0 : i64, scratch_operands = 0 : i64, tpu.core_type = #tpu.core_type<tc>, window_params = [{transform_indices = @transform_0, window_bounds = array<i64: 1, 8, 64>}, {pipeline_mode = #tpu.pipeline_mode<synchronous>, transform_indices = @transform_1, window_bounds = array<i64: 6, 64>}, {pipeline_mode = #tpu.pipeline_mode<synchronous>, transform_indices = @transform_2, window_bounds = array<i64: 1, 256>}, {pipeline_mode = #tpu.pipeline_mode<synchronous>, transform_indices = @transform_3, window_bounds = array<i64: 64, 192>}, {pipeline_mode = #tpu.pipeline_mode<synchronous>, transform_indices = @transform_4, window_bounds = array<i64: 8, 8, 64>}, {pipeline_mode = #tpu.pipeline_mode<synchronous>, transform_indices = @transform_5, window_bounds = array<i64: 64, 256>}, {pipeline_mode = #tpu.pipeline_mode<synchronous>, transform_indices = @transform_6, window_bounds = array<i64: 256, 64>}, {transform_indices = @transform_7, window_bounds = array<i64: 1, 8, 64>}]} {
    %c0 = arith.constant 0 : index
    %c0_0 = arith.constant 0 : index
    %c0_1 = arith.constant 0 : index
    %0 = vector.load %arg1[%c0, %c0_0, %c0_1] : memref<1x8x64xf32, #tpu.memory_space<vmem>>, vector<1x8x64xf32>
    %1 = vector.shape_cast %0 : vector<1x8x64xf32> to vector<8x64xf32>
    %c0_2 = arith.constant 0 : index
    %c0_3 = arith.constant 0 : index
    %2 = vector.load %arg2[%c0_2, %c0_3] : memref<6x64xf32, #tpu.memory_space<vmem>>, vector<6x64xf32>
    %3 = vector.extract_strided_slice %2 {offsets = [0, 0], sizes = [1, 64], strides = [1, 1]} : vector<6x64xf32> to vector<1x64xf32>
    %4 = vector.extract_strided_slice %2 {offsets = [1, 0], sizes = [1, 64], strides = [1, 1]} : vector<6x64xf32> to vector<1x64xf32>
    %5 = vector.extract_strided_slice %2 {offsets = [2, 0], sizes = [1, 64], strides = [1, 1]} : vector<6x64xf32> to vector<1x64xf32>
    %6 = vector.extract_strided_slice %2 {offsets = [3, 0], sizes = [1, 64], strides = [1, 1]} : vector<6x64xf32> to vector<1x64xf32>
    %7 = vector.extract_strided_slice %2 {offsets = [4, 0], sizes = [1, 64], strides = [1, 1]} : vector<6x64xf32> to vector<1x64xf32>
    %8 = vector.extract_strided_slice %2 {offsets = [5, 0], sizes = [1, 64], strides = [1, 1]} : vector<6x64xf32> to vector<1x64xf32>
    %cst = arith.constant dense<0.000000e+00> : vector<8xf32>
    %9 = vector.multi_reduction <add>, %1, %cst [1] : vector<8x64xf32> to vector<8xf32>
    %10 = vector.shape_cast %9 : vector<8xf32> to vector<8x1xf32>
    %cst_4 = arith.constant 6.400000e+01 : f32
    %11 = vector.broadcast %cst_4 : f32 to vector<8x1xf32>
    %12 = arith.divf %10, %11 : vector<8x1xf32>
    %13 = vector.broadcast %12 : vector<8x1xf32> to vector<8x64xf32>
    %14 = arith.subf %1, %13 : vector<8x64xf32>
    %15 = arith.mulf %14, %14 : vector<8x64xf32>
    %cst_5 = arith.constant dense<0.000000e+00> : vector<8xf32>
    %16 = vector.multi_reduction <add>, %15, %cst_5 [1] : vector<8x64xf32> to vector<8xf32>
    %17 = vector.shape_cast %16 : vector<8xf32> to vector<8x1xf32>
    %cst_6 = arith.constant 6.400000e+01 : f32
    %18 = vector.broadcast %cst_6 : f32 to vector<8x1xf32>
    %19 = arith.divf %17, %18 : vector<8x1xf32>
    %20 = vector.broadcast %12 : vector<8x1xf32> to vector<8x64xf32>
    %21 = arith.subf %1, %20 : vector<8x64xf32>
    %cst_7 = arith.constant 9.99999974E-6 : f32
    %22 = vector.broadcast %cst_7 : f32 to vector<8x1xf32>
    %23 = arith.addf %19, %22 : vector<8x1xf32>
    %24 = math.rsqrt %23 : vector<8x1xf32>
    %25 = vector.broadcast %24 : vector<8x1xf32> to vector<8x64xf32>
    %26 = arith.mulf %21, %25 : vector<8x64xf32>
    %27 = vector.broadcast %3 : vector<1x64xf32> to vector<8x64xf32>
    %28 = arith.mulf %26, %27 : vector<8x64xf32>
    %29 = vector.broadcast %4 : vector<1x64xf32> to vector<8x64xf32>
    %30 = arith.addf %28, %29 : vector<8x64xf32>
    %31 = arith.truncf %30 : vector<8x64xf32> to vector<8x64xbf16>
    %c0_8 = arith.constant 0 : index
    %c0_9 = arith.constant 0 : index
    %32 = vector.load %arg4[%c0_8, %c0_9] : memref<64x192xbf16, #tpu.memory_space<vmem>>, vector<64x192xbf16>
    %cst_10 = arith.constant dense<0.000000e+00> : vector<8x192xf32>
    %33 = tpu.matmul %31, %32, %cst_10 {dimension_numbers = #tpu.dot_dimension_numbers<[1], [0], [0], [1], [0, 0, 1, 1], [], []>} : vector<8x64xbf16>, vector<64x192xbf16>, vector<8x192xf32> -> vector<8x192xf32>
    %34 = vector.extract_strided_slice %33 {offsets = [0, 0], sizes = [8, 8], strides = [1, 1]} : vector<8x192xf32> to vector<8x8xf32>
    %35 = vector.extract_strided_slice %33 {offsets = [0, 8], sizes = [8, 8], strides = [1, 1]} : vector<8x192xf32> to vector<8x8xf32>
    %36 = vector.extract_strided_slice %33 {offsets = [0, 16], sizes = [8, 8], strides = [1, 1]} : vector<8x192xf32> to vector<8x8xf32>
    %37 = vector.extract_strided_slice %33 {offsets = [0, 24], sizes = [8, 8], strides = [1, 1]} : vector<8x192xf32> to vector<8x8xf32>
    %38 = vector.extract_strided_slice %33 {offsets = [0, 32], sizes = [8, 8], strides = [1, 1]} : vector<8x192xf32> to vector<8x8xf32>
    %39 = vector.extract_strided_slice %33 {offsets = [0, 40], sizes = [8, 8], strides = [1, 1]} : vector<8x192xf32> to vector<8x8xf32>
    %40 = vector.extract_strided_slice %33 {offsets = [0, 48], sizes = [8, 8], strides = [1, 1]} : vector<8x192xf32> to vector<8x8xf32>
    %41 = vector.extract_strided_slice %33 {offsets = [0, 56], sizes = [8, 8], strides = [1, 1]} : vector<8x192xf32> to vector<8x8xf32>
    %42 = vector.shape_cast %34 : vector<8x8xf32> to vector<1x8x8xf32>
    %43 = vector.shape_cast %35 : vector<8x8xf32> to vector<1x8x8xf32>
    %44 = vector.shape_cast %36 : vector<8x8xf32> to vector<1x8x8xf32>
    %45 = vector.shape_cast %37 : vector<8x8xf32> to vector<1x8x8xf32>
    %46 = vector.shape_cast %38 : vector<8x8xf32> to vector<1x8x8xf32>
    %47 = vector.shape_cast %39 : vector<8x8xf32> to vector<1x8x8xf32>
    %48 = vector.shape_cast %40 : vector<8x8xf32> to vector<1x8x8xf32>
    %49 = vector.shape_cast %41 : vector<8x8xf32> to vector<1x8x8xf32>
    %50 = tpu.concatenate %42, %43, %44, %45, %46, %47, %48, %49 in 0 : vector<1x8x8xf32>, vector<1x8x8xf32>, vector<1x8x8xf32>, vector<1x8x8xf32>, vector<1x8x8xf32>, vector<1x8x8xf32>, vector<1x8x8xf32>, vector<1x8x8xf32> -> vector<8x8x8xf32>
    %51 = vector.extract_strided_slice %33 {offsets = [0, 64], sizes = [8, 8], strides = [1, 1]} : vector<8x192xf32> to vector<8x8xf32>
    %52 = vector.extract_strided_slice %33 {offsets = [0, 72], sizes = [8, 8], strides = [1, 1]} : vector<8x192xf32> to vector<8x8xf32>
    %53 = vector.extract_strided_slice %33 {offsets = [0, 80], sizes = [8, 8], strides = [1, 1]} : vector<8x192xf32> to vector<8x8xf32>
    %54 = vector.extract_strided_slice %33 {offsets = [0, 88], sizes = [8, 8], strides = [1, 1]} : vector<8x192xf32> to vector<8x8xf32>
    %55 = vector.extract_strided_slice %33 {offsets = [0, 96], sizes = [8, 8], strides = [1, 1]} : vector<8x192xf32> to vector<8x8xf32>
    %56 = vector.extract_strided_slice %33 {offsets = [0, 104], sizes = [8, 8], strides = [1, 1]} : vector<8x192xf32> to vector<8x8xf32>
    %57 = vector.extract_strided_slice %33 {offsets = [0, 112], sizes = [8, 8], strides = [1, 1]} : vector<8x192xf32> to vector<8x8xf32>
    %58 = vector.extract_strided_slice %33 {offsets = [0, 120], sizes = [8, 8], strides = [1, 1]} : vector<8x192xf32> to vector<8x8xf32>
    %59 = vector.shape_cast %51 : vector<8x8xf32> to vector<1x8x8xf32>
    %60 = vector.shape_cast %52 : vector<8x8xf32> to vector<1x8x8xf32>
    %61 = vector.shape_cast %53 : vector<8x8xf32> to vector<1x8x8xf32>
    %62 = vector.shape_cast %54 : vector<8x8xf32> to vector<1x8x8xf32>
    %63 = vector.shape_cast %55 : vector<8x8xf32> to vector<1x8x8xf32>
    %64 = vector.shape_cast %56 : vector<8x8xf32> to vector<1x8x8xf32>
    %65 = vector.shape_cast %57 : vector<8x8xf32> to vector<1x8x8xf32>
    %66 = vector.shape_cast %58 : vector<8x8xf32> to vector<1x8x8xf32>
    %67 = tpu.concatenate %59, %60, %61, %62, %63, %64, %65, %66 in 0 : vector<1x8x8xf32>, vector<1x8x8xf32>, vector<1x8x8xf32>, vector<1x8x8xf32>, vector<1x8x8xf32>, vector<1x8x8xf32>, vector<1x8x8xf32>, vector<1x8x8xf32> -> vector<8x8x8xf32>
    %68 = vector.extract_strided_slice %33 {offsets = [0, 128], sizes = [8, 8], strides = [1, 1]} : vector<8x192xf32> to vector<8x8xf32>
    %69 = vector.extract_strided_slice %33 {offsets = [0, 136], sizes = [8, 8], strides = [1, 1]} : vector<8x192xf32> to vector<8x8xf32>
    %70 = vector.extract_strided_slice %33 {offsets = [0, 144], sizes = [8, 8], strides = [1, 1]} : vector<8x192xf32> to vector<8x8xf32>
    %71 = vector.extract_strided_slice %33 {offsets = [0, 152], sizes = [8, 8], strides = [1, 1]} : vector<8x192xf32> to vector<8x8xf32>
    %72 = vector.extract_strided_slice %33 {offsets = [0, 160], sizes = [8, 8], strides = [1, 1]} : vector<8x192xf32> to vector<8x8xf32>
    %73 = vector.extract_strided_slice %33 {offsets = [0, 168], sizes = [8, 8], strides = [1, 1]} : vector<8x192xf32> to vector<8x8xf32>
    %74 = vector.extract_strided_slice %33 {offsets = [0, 176], sizes = [8, 8], strides = [1, 1]} : vector<8x192xf32> to vector<8x8xf32>
    %75 = vector.extract_strided_slice %33 {offsets = [0, 184], sizes = [8, 8], strides = [1, 1]} : vector<8x192xf32> to vector<8x8xf32>
    %76 = vector.shape_cast %68 : vector<8x8xf32> to vector<1x8x8xf32>
    %77 = vector.shape_cast %69 : vector<8x8xf32> to vector<1x8x8xf32>
    %78 = vector.shape_cast %70 : vector<8x8xf32> to vector<1x8x8xf32>
    %79 = vector.shape_cast %71 : vector<8x8xf32> to vector<1x8x8xf32>
    %80 = vector.shape_cast %72 : vector<8x8xf32> to vector<1x8x8xf32>
    %81 = vector.shape_cast %73 : vector<8x8xf32> to vector<1x8x8xf32>
    %82 = vector.shape_cast %74 : vector<8x8xf32> to vector<1x8x8xf32>
    %83 = vector.shape_cast %75 : vector<8x8xf32> to vector<1x8x8xf32>
    %84 = tpu.concatenate %76, %77, %78, %79, %80, %81, %82, %83 in 0 : vector<1x8x8xf32>, vector<1x8x8xf32>, vector<1x8x8xf32>, vector<1x8x8xf32>, vector<1x8x8xf32>, vector<1x8x8xf32>, vector<1x8x8xf32>, vector<1x8x8xf32> -> vector<8x8x8xf32>
    %85 = arith.truncf %50 : vector<8x8x8xf32> to vector<8x8x8xbf16>
    %86 = arith.truncf %67 : vector<8x8x8xf32> to vector<8x8x8xbf16>
    "tpu.trace_start"() <{level = 10 : i32, message = "htd,hsd->hts"}> : () -> ()
    %cst_11 = arith.constant dense<0.000000e+00> : vector<8x8x8xf32>
    %87 = tpu.matmul %85, %86, %cst_11 {dimension_numbers = #tpu.dot_dimension_numbers<[2], [2], [1], [1], [0, 0, 0, 1, 1, 1], [0], [0]>} : vector<8x8x8xbf16>, vector<8x8x8xbf16>, vector<8x8x8xf32> -> vector<8x8x8xf32>
    "tpu.trace_stop"() : () -> ()
    %cst_12 = arith.constant 1.250000e-01 : f32
    %88 = vector.broadcast %cst_12 : f32 to vector<8x8x8xf32>
    %89 = arith.mulf %87, %88 : vector<8x8x8xf32>
    %90 = tpu.iota {dimensions = array<i32: 1>} : vector<8x8x8xi32>
    %91 = tpu.iota {dimensions = array<i32: 2>} : vector<8x8x8xi32>
    %92 = arith.cmpi sle, %91, %90 : vector<8x8x8xi32>
    %cst_13 = arith.constant -1.000000e+30 : f32
    %93 = vector.broadcast %cst_13 : f32 to vector<8x8x8xf32>
    %94 = arith.select %92, %89, %93 : vector<8x8x8xi1>, vector<8x8x8xf32>
    %cst_14 = arith.constant dense<0xFF800000> : vector<8x8xf32>
    %95 = vector.multi_reduction <maximumf>, %94, %cst_14 [2] : vector<8x8x8xf32> to vector<8x8xf32>
    %96 = vector.shape_cast %95 : vector<8x8xf32> to vector<8x8x1xf32>
    %97 = vector.broadcast %96 : vector<8x8x1xf32> to vector<8x8x8xf32>
    %98 = arith.subf %94, %97 : vector<8x8x8xf32>
    %99 = math.exp %98 : vector<8x8x8xf32>
    %cst_15 = arith.constant dense<0.000000e+00> : vector<8x8xf32>
    %100 = vector.multi_reduction <add>, %99, %cst_15 [2] : vector<8x8x8xf32> to vector<8x8xf32>
    %101 = vector.shape_cast %100 : vector<8x8xf32> to vector<8x8x1xf32>
    %102 = tpu.reciprocal %101 {approx = true} : vector<8x8x1xf32> -> vector<8x8x1xf32>
    %103 = vector.broadcast %102 : vector<8x8x1xf32> to vector<8x8x8xf32>
    %104 = arith.mulf %99, %103 : vector<8x8x8xf32>
    %105 = arith.truncf %104 : vector<8x8x8xf32> to vector<8x8x8xbf16>
    %106 = arith.truncf %84 : vector<8x8x8xf32> to vector<8x8x8xbf16>
    "tpu.trace_start"() <{level = 10 : i32, message = "hts,hsd->htd"}> : () -> ()
    %cst_16 = arith.constant dense<0.000000e+00> : vector<8x8x8xf32>
    %107 = tpu.matmul %105, %106, %cst_16 {dimension_numbers = #tpu.dot_dimension_numbers<[2], [1], [1], [2], [0, 0, 0, 1, 1, 2], [0], [0]>} : vector<8x8x8xbf16>, vector<8x8x8xbf16>, vector<8x8x8xf32> -> vector<8x8x8xf32>
    "tpu.trace_stop"() : () -> ()
    %108 = arith.truncf %107 : vector<8x8x8xf32> to vector<8x8x8xbf16>
    %c0_17 = arith.constant 0 : index
    %c0_18 = arith.constant 0 : index
    %c0_19 = arith.constant 0 : index
    %109 = vector.load %arg5[%c0_17, %c0_18, %c0_19] : memref<8x8x64xbf16, #tpu.memory_space<vmem>>, vector<8x8x64xbf16>
    "tpu.trace_start"() <{level = 10 : i32, message = "htd,hdc->htc"}> : () -> ()
    %cst_20 = arith.constant dense<0.000000e+00> : vector<8x8x64xf32>
    %110 = tpu.matmul %108, %109, %cst_20 {dimension_numbers = #tpu.dot_dimension_numbers<[2], [1], [1], [2], [0, 0, 0, 1, 1, 2], [0], [0]>} : vector<8x8x8xbf16>, vector<8x8x64xbf16>, vector<8x8x64xf32> -> vector<8x8x64xf32>
    "tpu.trace_stop"() : () -> ()
    %cst_21 = arith.constant dense<0.000000e+00> : vector<8x64xf32>
    %111 = vector.multi_reduction <add>, %110, %cst_21 [0] : vector<8x8x64xf32> to vector<8x64xf32>
    %112 = vector.broadcast %7 : vector<1x64xf32> to vector<8x64xf32>
    %113 = arith.addf %111, %112 : vector<8x64xf32>
    %114 = arith.addf %1, %113 : vector<8x64xf32>
    %cst_22 = arith.constant dense<0.000000e+00> : vector<8xf32>
    %115 = vector.multi_reduction <add>, %114, %cst_22 [1] : vector<8x64xf32> to vector<8xf32>
    %116 = vector.shape_cast %115 : vector<8xf32> to vector<8x1xf32>
    %cst_23 = arith.constant 6.400000e+01 : f32
    %117 = vector.broadcast %cst_23 : f32 to vector<8x1xf32>
    %118 = arith.divf %116, %117 : vector<8x1xf32>
    %119 = vector.broadcast %118 : vector<8x1xf32> to vector<8x64xf32>
    %120 = arith.subf %114, %119 : vector<8x64xf32>
    %121 = arith.mulf %120, %120 : vector<8x64xf32>
    %cst_24 = arith.constant dense<0.000000e+00> : vector<8xf32>
    %122 = vector.multi_reduction <add>, %121, %cst_24 [1] : vector<8x64xf32> to vector<8xf32>
    %123 = vector.shape_cast %122 : vector<8xf32> to vector<8x1xf32>
    %cst_25 = arith.constant 6.400000e+01 : f32
    %124 = vector.broadcast %cst_25 : f32 to vector<8x1xf32>
    %125 = arith.divf %123, %124 : vector<8x1xf32>
    %126 = vector.broadcast %118 : vector<8x1xf32> to vector<8x64xf32>
    %127 = arith.subf %114, %126 : vector<8x64xf32>
    %cst_26 = arith.constant 9.99999974E-6 : f32
    %128 = vector.broadcast %cst_26 : f32 to vector<8x1xf32>
    %129 = arith.addf %125, %128 : vector<8x1xf32>
    %130 = math.rsqrt %129 : vector<8x1xf32>
    %131 = vector.broadcast %130 : vector<8x1xf32> to vector<8x64xf32>
    %132 = arith.mulf %127, %131 : vector<8x64xf32>
    %133 = vector.broadcast %5 : vector<1x64xf32> to vector<8x64xf32>
    %134 = arith.mulf %132, %133 : vector<8x64xf32>
    %135 = vector.broadcast %6 : vector<1x64xf32> to vector<8x64xf32>
    %136 = arith.addf %134, %135 : vector<8x64xf32>
    %137 = arith.truncf %136 : vector<8x64xf32> to vector<8x64xbf16>
    %c0_27 = arith.constant 0 : index
    %c0_28 = arith.constant 0 : index
    %138 = vector.load %arg6[%c0_27, %c0_28] : memref<64x256xbf16, #tpu.memory_space<vmem>>, vector<64x256xbf16>
    %cst_29 = arith.constant dense<0.000000e+00> : vector<8x256xf32>
    %139 = tpu.matmul %137, %138, %cst_29 {dimension_numbers = #tpu.dot_dimension_numbers<[1], [0], [0], [1], [0, 0, 1, 1], [], []>} : vector<8x64xbf16>, vector<64x256xbf16>, vector<8x256xf32> -> vector<8x256xf32>
    %c0_30 = arith.constant 0 : index
    %c0_31 = arith.constant 0 : index
    %140 = vector.load %arg3[%c0_30, %c0_31] : memref<1x256xf32, #tpu.memory_space<vmem>>, vector<1x256xf32>
    %141 = vector.broadcast %140 : vector<1x256xf32> to vector<8x256xf32>
    %142 = arith.addf %139, %141 : vector<8x256xf32>
    %cst_32 = arith.constant 0.000000e+00 : f32
    %143 = vector.broadcast %cst_32 : f32 to vector<8x256xf32>
    %144 = arith.maximumf %142, %143 : vector<8x256xf32>
    %145 = arith.truncf %144 : vector<8x256xf32> to vector<8x256xbf16>
    %c0_33 = arith.constant 0 : index
    %c0_34 = arith.constant 0 : index
    %146 = vector.load %arg7[%c0_33, %c0_34] : memref<256x64xbf16, #tpu.memory_space<vmem>>, vector<256x64xbf16>
    %cst_35 = arith.constant dense<0.000000e+00> : vector<8x64xf32>
    %147 = tpu.matmul %145, %146, %cst_35 {dimension_numbers = #tpu.dot_dimension_numbers<[1], [0], [0], [1], [0, 0, 1, 1], [], []>} : vector<8x256xbf16>, vector<256x64xbf16>, vector<8x64xf32> -> vector<8x64xf32>
    %148 = vector.broadcast %8 : vector<1x64xf32> to vector<8x64xf32>
    %149 = arith.addf %147, %148 : vector<8x64xf32>
    %150 = arith.addf %114, %149 : vector<8x64xf32>
    %c0_36 = arith.constant 0 : index
    %c0_37 = arith.constant 0 : index
    %c0_38 = arith.constant 0 : index
    %151 = vector.load %arg8[%c0_36, %c0_37, %c0_38] : memref<1x8x64xf32, #tpu.memory_space<vmem>>, vector<1x8x64xf32>
    %152 = vector.shape_cast %151 : vector<1x8x64xf32> to vector<8x64xf32>
    %153 = vector.shape_cast %150 : vector<8x64xf32> to vector<1x8x64xf32>
    tpu.vector_store %arg8[%c0_36, %c0_37, %c0_38], %153 {strides = array<i32>} : memref<1x8x64xf32, #tpu.memory_space<vmem>>, vector<1x8x64xf32>,
    return
  }
  func.func @transform_0(%arg0: i32) -> (i32, i32, i32) {
    %c0_i32 = arith.constant 0 : i32
    %c0_i32_0 = arith.constant 0 : i32
    %c0_i32_1 = arith.constant 0 : i32
    return %arg0, %c0_i32, %c0_i32_0 : i32, i32, i32
  }
  func.func @transform_1(%arg0: i32) -> (i32, i32) {
    %c0_i32 = arith.constant 0 : i32
    %c0_i32_0 = arith.constant 0 : i32
    %c0_i32_1 = arith.constant 0 : i32
    return %c0_i32, %c0_i32_0 : i32, i32
  }
  func.func @transform_2(%arg0: i32) -> (i32, i32) {
    %c0_i32 = arith.constant 0 : i32
    %c0_i32_0 = arith.constant 0 : i32
    %c0_i32_1 = arith.constant 0 : i32
    return %c0_i32, %c0_i32_0 : i32, i32
  }
  func.func @transform_3(%arg0: i32) -> (i32, i32) {
    %c0_i32 = arith.constant 0 : i32
    %c0_i32_0 = arith.constant 0 : i32
    %c0_i32_1 = arith.constant 0 : i32
    return %c0_i32, %c0_i32_0 : i32, i32
  }
  func.func @transform_4(%arg0: i32) -> (i32, i32, i32) {
    %c0_i32 = arith.constant 0 : i32
    %c0_i32_0 = arith.constant 0 : i32
    %c0_i32_1 = arith.constant 0 : i32
    %c0_i32_2 = arith.constant 0 : i32
    return %c0_i32, %c0_i32_0, %c0_i32_1 : i32, i32, i32
  }
  func.func @transform_5(%arg0: i32) -> (i32, i32) {
    %c0_i32 = arith.constant 0 : i32
    %c0_i32_0 = arith.constant 0 : i32
    %c0_i32_1 = arith.constant 0 : i32
    return %c0_i32, %c0_i32_0 : i32, i32
  }
  func.func @transform_6(%arg0: i32) -> (i32, i32) {
    %c0_i32 = arith.constant 0 : i32
    %c0_i32_0 = arith.constant 0 : i32
    %c0_i32_1 = arith.constant 0 : i32
    return %c0_i32, %c0_i32_0 : i32, i32
  }
  func.func @transform_7(%arg0: i32) -> (i32, i32, i32) {
    %c0_i32 = arith.constant 0 : i32
    %c0_i32_0 = arith.constant 0 : i32
    %c0_i32_1 = arith.constant 0 : i32
    return %arg0, %c0_i32, %c0_i32_0 : i32, i32, i32
  }
}

</mosaic_0001>

<bundles_post_ra>
// kernel: tpu_custom_call.1
= control target key start
LH: loop header
LB: loop body
LE: loop exit
PB: predicated region body
PF: predicated region fallthrough
CT: control target
= control target key end

     0   :  { %12 = vsyncpa [#allocation3], 0  ;;  %s3137_s0 = inlined_call_operand.vmem [shape: f32[2,8,64], index: 0, kind: input, shape index: {}]   ;;  %s3138_s1 = inlined_call_operand.vmem [shape: f32[6,64], index: 1, kind: input, shape index: {}]   ;;  %s3139_s2 = inlined_call_operand.vmem [shape: f32[1,256], index: 2, kind: input, shape index: {}]   ;;  %s3140_s3 = inlined_call_operand.vmem [shape: bf16[64,192], index: 3, kind: input, shape index: {}]   ;;  %s3141_s4 = inlined_call_operand.vmem [shape: bf16[8,8,64], index: 4, kind: input, shape index: {}]   ;;  %s3142_s5 = inlined_call_operand.vmem [shape: bf16[64,256], index: 5, kind: input, shape index: {}]   ;;  %s3143_s6 = inlined_call_operand.vmem [shape: bf16[256,64], index: 6, kind: input, shape index: {}]   ;;  %s3144_s7 = inlined_call_operand.hbm [shape: f32[2,8,64], index: 7, kind: output, shape index: {}]  }
   0x1   :  { %14 = vsyncpa [#allocation3 + $0x1], 0  ;;  %s2642_s24 = smov 0   ;;  %s2644_s25 = smov 0  }
   0x2   :  { %s2646_s26 = smov 0   ;;  %s2648_s27 = smov 0  }
   0x3 LB: > { %s2663_s28 = sadd.s32 4294967295, %s2588_s27   ;;  %s2118_s29 = sadd.s32 4294967294, %s2588_s27   ;;  %s2588_s27 = sphi %s2648_s27, %s3152_s27   ;;  %s2584_s26 = sphi %s2646_s26, %s3151_s26   ;;  %s2580_s25 = sphi %s2644_s25, %s3150_s25   ;;  %s2576_s24 = sphi %s2642_s24, %s3149_s24  }
   0x4   : > { %s2667_s30 = sadd.s32 1, %s2588_s27   ;;  %s179_s8 = sadd.s32 1, %s2584_s26 }
   0x5   : > { %s176_s9 = ssub.s32 %s2588_s27, %s2667_s30  ;;  %p189_p0 = scmp.ne.s32.totalorder %s2584_s26, %s2580_s25 }
   0x6   : > { %p177_p1 = scmp.eq.s32.totalorder %s176_s9, 0  ;;  %p190_p2 = scmp.eq.s32.totalorder %s2663_s28, 1 }
   0x7   : > { %p195_p3 = scmp.ne.s32.totalorder %s2580_s25, %s2576_s24  ;;  %p196_p4 = scmp.eq.s32.totalorder %s2118_s29, 1 }
   0x8   : > { %s2678_s10 = scalar_select %p177_p1, %s2584_s26, %s179_s8  }
   0x9   : > { %p2680_p5 = por %p190_p2, %p189_p0  ;;  %p2684_p6 = por %p196_p4, %p195_p3 }
   0xa   : > { %p2121_p7 = scmp.ge.s32.totalorder %s2588_s27, 1  ;;  %p239_p8 = scmp.lt.s32.totalorder %s2588_s27, 3 }
   0xc   : > { %p240_p9 = pnand %p2121_p7, %p239_p8 }
   0xd   : > { %p270_p10 = scmp.lt.s32.totalorder (!%p240_p9), %s2663_s28, 1  ;;  %s2591_s23 = smov (!%p240_p9), 104  }
   0xe   : > { %243 = sbr.rel (%p240_p9) target bundleno = 2467 (0x9a3), region = 48  ;;  %s2592_s29 = smov (!%p240_p9), 120  }
   0xf   : > { %s2593_s8 = smov (!%p240_p9), 112   ;;  %s2594_s9 = smov (!%p240_p9), 96  }
  0x10   : > { %s2599_s15 = smov (!%p240_p9), 72   ;;  %s2600_s16 = smov (!%p240_p9), 64  }
  0x11   : > { %s2183_s19 = sshll.u32 (!%p240_p9), %s2663_s28, 7 }
  0x13   : > { %s271_s13 = scalar_select %p270_p10, %s2663_s28, 1  ;;  %vm277_vm0 = vcmask 523264   ;;  %v2450_v7 = vld [vmem:[%s3140_s3 + $0x34] ss:$8 sps:$4 sm:$0xff]   ;;  %v2452_v8 = vld [vmem:[%s3140_s3 + $0x30] ss:$8 sps:$4 sm:$0xff]   ;;  %v292_v19 = vlaneseq }
  0x14   : > { %v2453_v9 = vld [vmem:[%s3140_s3 + $0x24] ss:$8 sps:$4 sm:$0xff]   ;;  %362 = vmatprep.subr.bf16.mxu0 %v2450_v7  ;;  %v2455_v10 = vld [vmem:[%s3140_s3 + $0x20] ss:$8 sps:$4 sm:$0xff]   ;;  %v2590_v11 = vmov 0   ;;  %v2595_v35 = vmov 0.0  }
  0x15   : > { %s2123_s14 = sshll.u32 %s271_s13, 3  ;;  %363 = vmatpush1.bf16.msra.mxu0 %v2452_v8  ;;  %386 = vmatprep.mubr.bf16.mxu0 %v2590_v11  ;;  %v2456_v12 = vld [vmem:[%s3140_s3 + $0x14] ss:$8 sps:$4 sm:$0xff]   ;;  %v2458_v13 = vld [vmem:[%s3140_s3 + $0x10] ss:$8 sps:$4 sm:$0xff]   ;;  %v2726_v20 = vshrl.u32 %v292_v19, 7 }
  0x16   : > { %s2695_s17 = scalar_lea.vmem %s3137_s0, %s2123_s14  ;;  %364 = vmatprep.subr.bf16.mxu0 %v2453_v9  ;;  %v2459_v14 = vld [vmem:[%s3140_s3 + $0x4] ss:$8 sps:$4 sm:$0xff]   ;;  %v2461_v15 = vld [vmem:[%s3140_s3] ss:$8 sps:$4 sm:$0xff]   ;;  %2262 = vmatprep.subr.bf16.mxu1 %v2595_v35  ;;  %s2596_s13 = smov 88   ;;  %vm2597_vm1 = vmmov 0  }
  0x17   : > { %v275_v0 = vld [vmem:[%s2695_s17] sm:$0xff]  ;;  %v294_v21 = vsub.s32 0, %v2726_v20  ;;  %v299_v23 = vsub.s32 1, %v2726_v20  ;;  %2264 = vmatprep.mubr.msk.bf16.mxu1 %vm2597_vm1, %v2595_v35  ;;  %s2598_s14 = smov 80   ;;  %vm450_vm2 = vcmask 64512   ;;  %vm968_vm3 = vcmask 1043456  }
  0x18   : > { %v278_v1 = vsel %vm277_vm0, %v275_v0, 0.0  ;;  %v2732_v22 = vld [vmem:[%s3138_s1] sm:$0x3f]  ;;  %s2601_s28 = smov [#allocation2]  }
  0x19   : > { %279 = vadd.xlane.f32.xlu0 %v278_v1  ;;  %365 = vmatpush1.bf16.msra.mxu0 %v2455_v10  ;;  %v295_v24 = vrot.slane %v2732_v22, %v294_v21  ;;  %v300_v27 = vrot.slane %v2732_v22, %v299_v23 }
  0x1a   : > { %366 = vmatprep.subr.bf16.mxu0 %v2456_v12 }
  0x1d   : > { %367 = vmatpush1.bf16.msra.mxu0 %v2458_v13 }
  0x1e   : > { %368 = vmatprep.subr.bf16.mxu0 %v2459_v14 }
  0x21   : > { %369 = vmatpush1.bf16.msra.mxu0 %v2461_v15 }
  0x22   : > { %2256 = vmatprep.subr.bf16.mxu0 %v2595_v35 }
  0xa2   : > { %v280_v2 = vpop.xlane.xlu0 %279 }
  0xa3   : > { %v282_v3 = vmul.f32 0.015625, %v280_v2 }
  0xa5   : > { %v283_v4 = vsub.f32 %v275_v0, %v282_v3 }
  0xa7   : > { %v284_v5 = vmul.f32 %v283_v4, %v283_v4 }
  0xa9   : > { %v285_v6 = vsel %vm277_vm0, %v284_v5, 0.0  ;;  %v851_v5 = vand.u32 127, %v292_v19 }
  0xaa   : > { %286 = vadd.xlane.f32.xlu0 %v285_v6 }
  0xab   : > { %vm2803_vm4 = vcmp.le.s32.totalorder %v851_v5, %v2726_v20 }
 0x133   : > { %v287_v16 = vpop.xlane.xlu0 %286 }
 0x134   : > { %v288_v17 = vmul.f32 0.015625, %v287_v16 }
 0x136   : > { %v289_v18 = vadd.f32 1e-05, %v288_v17 }
 0x138   : > { %2490 = vrsqrt.f32 %v289_v18 }
 0x145   : > { %v2491_v25 = vpop.eup %2490 }
 0x146   : > { %v291_v26 = vmul.f32 %v2491_v25, %v283_v4 }
 0x148   : > { %v296_v28 = vmul.f32 %v295_v24, %v291_v26 }
 0x14a   : > { %v301_v29 = vadd.f32 %v300_v27, %v296_v28 }
 0x14c   : > { %v302_v30 = vpack.c.bf16 %v301_v29, %v301_v29 }
 0x14e   : > { %2132 = vmatmul.mubr.msk.bf16.vlgmr.msra.gmra.mxu0 %vm277_vm0, %v302_v30 }
 0x14f   : > { %2258 = vmatprep.mubr.msk.bf16.mxu0 %vm2597_vm1, %v2595_v35 }
 0x20e   : > { %v388_v31 = vpop.f32.mrf.mxu0 }
 0x20f   : > { %402 = vrot.lane.b32.xlu0 %v388_v31, %s2591_s23  ;;  %396 = vrot.lane.b32.xlu1 %v388_v31, %s2592_s29  ;;  %v439_v36 = vpack.c.bf16 %v388_v31, %v388_v31 }
 0x210   : > { %v2744_v32 = vpop.f32.mrf.mxu0 }
 0x211   : > { %v957_v3 = vpack.c.bf16 %v2744_v32, %v2744_v32 }
 0x212   : > { %v392_v33 = vpop.f32.mrf.mxu0 }
 0x213   : > { %399 = vrot.lane.b32.xlu1 %v388_v31, %s2593_s8  ;;  %v970_v4 = vsel %vm968_vm3, %v957_v3, 0 }
 0x214   : > { %v393_v34 = vpop.f32.mrf.mxu0 }
 0x217   : > { %405 = vrot.lane.b32.xlu1 %v388_v31, %s2594_s9 }
 0x21b   : > { %408 = vrot.lane.b32.xlu1 %v388_v31, %s2596_s13 }
 0x21f   : > { %411 = vrot.lane.b32.xlu1 %v388_v31, %s2598_s14 }
 0x223   : > { %414 = vrot.lane.b32.xlu1 %v388_v31, %s2599_s15 }
 0x227   : > { %448 = vrot.lane.b32.xlu1 %v439_v36, %s2600_s16 }
 0x281   : > { %v397_v37 = vpop.permute.xlu1 %396  ;;  %v403_v39 = vpop.permute.xlu0 %402 }
 0x282   : > { %v440_v38 = vpack.c.bf16 %v397_v37, %v397_v37  ;;  %v442_v41 = vpack.c.bf16 %v403_v39, %v403_v39 }
 0x284   : > { %498 = vrot.lane.b32.xlu1 %v440_v38, %s2600_s16 }
 0x285   : > { %v400_v40 = vpop.permute.xlu1 %399 }
 0x286   : > { %v441_v42 = vpack.c.bf16 %v400_v40, %v400_v40 }
 0x288   : > { %547 = vrot.lane.b32.xlu0 %v441_v42, %s2600_s16  ;;  %596 = vrot.lane.b32.xlu1 %v442_v41, %s2600_s16 }
 0x289   : > { %v406_v43 = vpop.permute.xlu1 %405 }
 0x28a   : > { %v443_v44 = vpack.c.bf16 %v406_v43, %v406_v43 }
 0x28c   : > { %645 = vrot.lane.b32.xlu0 %v443_v44, %s2600_s16 }
 0x28d   : > { %v409_v45 = vpop.permute.xlu1 %408 }
 0x28e   : > { %v444_v46 = vpack.c.bf16 %v409_v45, %v409_v45 }
 0x290   : > { %694 = vrot.lane.b32.xlu1 %v444_v46, %s2600_s16 }
 0x291   : > { %v412_v47 = vpop.permute.xlu1 %411 }
 0x292   : > { %v445_v48 = vpack.c.bf16 %v412_v47, %v412_v47 }
 0x294   : > { %743 = vrot.lane.b32.xlu0 %v445_v48, %s2600_s16 }
 0x295   : > { %v415_v49 = vpop.permute.xlu1 %414 }
 0x296   : > { %v446_v50 = vpack.c.bf16 %v415_v49, %v415_v49 }
 0x298   : > { %792 = vrot.lane.b32.xlu1 %v446_v50, %s2600_s16  ;;  %s267_s16 = sand.u32 1, %s2580_s25  }
 0x299   : > { %v449_v51 = vpop.permute.xlu1 %448  ;;  %s2122_s18 = sshll.u32 %s267_s16, 3 }
 0x29a   : > { %v455_v52 = vsel %vm450_vm2, %v449_v51, 0  ;;  %s269_s20 = scalar_lea.vmem [#allocation2], %s2122_s18 }
 0x29b   : > { %2257 = vmatpush3.bf16.xpose.msra.mxu0 %v455_v52  ;;  %s2059_s21 = sshll.u32 %s269_s20, 4  ;;  %s2060_s21 = int_to_ptr.vmem [resolvable:$true] %s2059_s21 }
 0x29c   : > { %2268 = vmatprep.subr.bf16.mxu0 %v2595_v35 }
 0x2a2   : > { %2259 = vmatmul.mubr.msk.bf16.vlgmr.msra.gmra.mxu0 %vm450_vm2, %v439_v36 }
 0x2a3   : > { %2270 = vmatprep.mubr.msk.bf16.mxu0 %vm2597_vm1, %v2595_v35 }
 0x2f6   : > { %v499_v53 = vpop.permute.xlu1 %498 }
 0x2f7   : > { %v504_v54 = vsel %vm450_vm2, %v499_v53, 0 }
 0x2f8   : > { %2263 = vmatpush3.bf16.xpose.msra.mxu1 %v504_v54 }
 0x2f9   : > { %2274 = vmatprep.subr.bf16.mxu1 %v2595_v35 }
 0x2fa   : > { %v548_v55 = vpop.permute.xlu0 %547  ;;  %v597_v57 = vpop.permute.xlu1 %596 }
 0x2fb   : > { %v553_v56 = vsel %vm450_vm2, %v548_v55, 0  ;;  %v602_v58 = vsel %vm450_vm2, %v597_v57, 0 }
 0x2fc   : > { %2269 = vmatpush3.bf16.xpose.msra.mxu0 %v553_v56 }
 0x2fd   : > { %2280 = vmatprep.subr.bf16.mxu0 %v2595_v35 }
 0x2fe   : > { %v646_v59 = vpop.permute.xlu0 %645 }
 0x2ff   : > { %2265 = vmatmul.mubr.msk.bf16.vlgmr.msra.gmra.mxu1 %vm450_vm2, %v440_v38  ;;  %v651_v60 = vsel %vm450_vm2, %v646_v59, 0 }
 0x300   : > { %2275 = vmatpush3.bf16.xpose.msra.mxu1 %v602_v58  ;;  %2276 = vmatprep.mubr.msk.bf16.mxu1 %vm2597_vm1, %v2595_v35 }
 0x301   : > { %2286 = vmatprep.subr.bf16.mxu1 %v2595_v35 }
 0x302   : > { %v695_v61 = vpop.permute.xlu1 %694 }
 0x303   : > { %2271 = vmatmul.mubr.msk.bf16.vlgmr.msra.gmra.mxu0 %vm450_vm2, %v441_v42  ;;  %v700_v62 = vsel %vm450_vm2, %v695_v61, 0 }
 0x304   : > { %2281 = vmatpush3.bf16.xpose.msra.mxu0 %v651_v60  ;;  %2282 = vmatprep.mubr.msk.bf16.mxu0 %vm2597_vm1, %v2595_v35 }
 0x305   : > { %2292 = vmatprep.subr.bf16.mxu0 %v2595_v35 }
 0x306   : > { %v744_v63 = vpop.permute.xlu0 %743 }
 0x307   : > { %2277 = vmatmul.mubr.msk.bf16.vlgmr.msra.gmra.mxu1 %vm450_vm2, %v442_v41  ;;  %v749_v0 = vsel %vm450_vm2, %v744_v63, 0 }
 0x308   : > { %2287 = vmatpush3.bf16.xpose.msra.mxu1 %v700_v62  ;;  %2288 = vmatprep.mubr.msk.bf16.mxu1 %vm2597_vm1, %v2595_v35 }
 0x309   : > { %2298 = vmatprep.subr.bf16.mxu1 %v2595_v35 }
 0x30a   : > { %v793_v1 = vpop.permute.xlu1 %792 }
 0x30b   : > { %2283 = vmatmul.mubr.msk.bf16.vlgmr.msra.gmra.mxu0 %vm450_vm2, %v443_v44  ;;  %v798_v2 = vsel %vm450_vm2, %v793_v1, 0 }
 0x30c   : > { %2293 = vmatpush3.bf16.xpose.msra.mxu0 %v749_v0  ;;  %2294 = vmatprep.mubr.msk.bf16.mxu0 %vm2597_vm1, %v2595_v35 }
 0x30d   : > { %2304 = vmatprep.subr.bf16.mxu0 %v2595_v35 }
 0x30f   : > { %2289 = vmatmul.mubr.msk.bf16.vlgmr.msra.gmra.mxu1 %vm450_vm2, %v444_v46 }
 0x310   : > { %2299 = vmatpush3.bf16.xpose.msra.mxu1 %v798_v2  ;;  %2300 = vmatprep.mubr.msk.bf16.mxu1 %vm2597_vm1, %v2595_v35 }
 0x311   : > { %2310 = vmatprep.subr.bf16.mxu1 %v2595_v35 }
 0x313   : > { %2295 = vmatmul.mubr.msk.bf16.vlgmr.msra.gmra.mxu0 %vm450_vm2, %v445_v48 }
 0x314   : > { %2305 = vmatpush3.bf16.msra.mxu0 %v970_v4  ;;  %2306 = vmatprep.mubr.msk.bf16.mxu0 %vm2597_vm1, %v2595_v35 }
 0x315   : > { %2316 = vmatprep.subr.bf16.mxu0 %v2595_v35 }
 0x317   : > { %2301 = vmatmul.mubr.msk.bf16.vlgmr.msra.gmra.mxu1 %vm450_vm2, %v446_v50 }
 0x318   : > { %2312 = vmatprep.mubr.msk.bf16.mxu1 %vm2597_vm1, %v2595_v35 }
 0x362   : > { %v491_v6 = vpop.f32.mrf.mxu0 }
 0x363   : > { %v840_v8 = vmul.f32 0.125, %v491_v6 }
 0x364   : > { %v2260_v9 = vpop.f32.mrf.mxu0 }
 0x365   : > { %v2809_v10 = vsel %vm2803_vm4, %v840_v8, -1e+30 }
 0x366   : > { %v494_v12 = vpop.f32.mrf.mxu0  ;;  %v861_v13 = vsel %vm450_vm2, %v2809_v10, -inf }
 0x367   : > { %862 = vmax.xlane.f32.xlu0 %v861_v13 }
 0x368   : > { %v2261_v14 = vpop.f32.mrf.mxu0 }
 0x3bf   : > { %v540_v15 = vpop.f32.mrf.mxu1 }
 0x3c0   : > { %v841_v16 = vmul.f32 0.125, %v540_v15 }
 0x3c1   : > { %v2266_v17 = vpop.f32.mrf.mxu1 }
 0x3c2   : > { %v2815_v18 = vsel %vm2803_vm4, %v841_v16, -1e+30 }
 0x3c3   : > { %v543_v19 = vpop.f32.mrf.mxu1  ;;  %v589_v24 = vpop.f32.mrf.mxu0  ;;  %v864_v25 = vsel %vm450_vm2, %v2815_v18, -inf }
 0x3c4   : > { %v842_v26 = vmul.f32 0.125, %v589_v24  ;;  %865 = vmax.xlane.f32.xlu1 %v864_v25 }
 0x3c5   : > { %v2267_v27 = vpop.f32.mrf.mxu1  ;;  %v2272_v28 = vpop.f32.mrf.mxu0 }
 0x3c6   : > { %v855_v29 = vsel %vm2803_vm4, %v842_v26, -1e+30 }
 0x3c7   : > { %v592_v30 = vpop.f32.mrf.mxu0  ;;  %v638_v31 = vpop.f32.mrf.mxu1  ;;  %v867_v33 = vsel %vm450_vm2, %v855_v29, -inf }
 0x3c8   : > { %v843_v34 = vmul.f32 0.125, %v638_v31  ;;  %868 = vmax.xlane.f32.xlu0 %v867_v33 }
 0x3c9   : > { %v2273_v36 = vpop.f32.mrf.mxu0  ;;  %v2278_v37 = vpop.f32.mrf.mxu1 }
 0x3ca   : > { %v2824_v38 = vsel %vm2803_vm4, %v843_v34, -1e+30 }
 0x3cb   : > { %v641_v39 = vpop.f32.mrf.mxu1  ;;  %v687_v40 = vpop.f32.mrf.mxu0  ;;  %v870_v41 = vsel %vm450_vm2, %v2824_v38, -inf }
 0x3cc   : > { %v844_v42 = vmul.f32 0.125, %v687_v40  ;;  %871 = vmax.xlane.f32.xlu0 %v870_v41 }
 0x3cd   : > { %v2279_v43 = vpop.f32.mrf.mxu1  ;;  %v2284_v44 = vpop.f32.mrf.mxu0 }
 0x3ce   : > { %v857_v45 = vsel %vm2803_vm4, %v844_v42, -1e+30 }
 0x3cf   : > { %v690_v46 = vpop.f32.mrf.mxu0  ;;  %v736_v47 = vpop.f32.mrf.mxu1  ;;  %v873_v48 = vsel %vm450_vm2, %v857_v45, -inf }
 0x3d0   : > { %v845_v49 = vmul.f32 0.125, %v736_v47  ;;  %874 = vmax.xlane.f32.xlu1 %v873_v48 }
 0x3d1   : > { %v2285_v50 = vpop.f32.mrf.mxu0  ;;  %v2290_v51 = vpop.f32.mrf.mxu1 }
 0x3d2   : > { %v2833_v52 = vsel %vm2803_vm4, %v845_v49, -1e+30 }
 0x3d3   : > { %v739_v53 = vpop.f32.mrf.mxu1  ;;  %v785_v54 = vpop.f32.mrf.mxu0  ;;  %v876_v55 = vsel %vm450_vm2, %v2833_v52, -inf }
 0x3d4   : > { %v846_v56 = vmul.f32 0.125, %v785_v54  ;;  %877 = vmax.xlane.f32.xlu0 %v876_v55 }
 0x3d5   : > { %v2291_v57 = vpop.f32.mrf.mxu1  ;;  %v2296_v58 = vpop.f32.mrf.mxu0 }
 0x3d6   : > { %v859_v59 = vsel %vm2803_vm4, %v846_v56, -1e+30 }
 0x3d7   : > { %v788_v60 = vpop.f32.mrf.mxu0  ;;  %v834_v61 = vpop.f32.mrf.mxu1  ;;  %v879_v62 = vsel %vm450_vm2, %v859_v59, -inf }
 0x3d8   : > { %v847_v63 = vmul.f32 0.125, %v834_v61  ;;  %880 = vmax.xlane.f32.xlu1 %v879_v62 }
 0x3d9   : > { %v2297_v0 = vpop.f32.mrf.mxu0  ;;  %v2302_v1 = vpop.f32.mrf.mxu1 }
 0x3da   : > { %v860_v2 = vsel %vm2803_vm4, %v847_v63, -1e+30 }
 0x3db   : > { %v837_v3 = vpop.f32.mrf.mxu1  ;;  %v882_v4 = vsel %vm450_vm2, %v860_v2, -inf }
 0x3dc   : > { %883 = vmax.xlane.f32.xlu0 %v882_v4 }
 0x3dd   : > { %v2303_v5 = vpop.f32.mrf.mxu1 }
 0x3e9   : > { %421 = vrot.lane.b32.xlu1 %v2744_v32, %s2593_s8  ;;  %s2528_s8 = scalar_lea.vmem %s2060_s21, 128 }
 0x3ea   : > { %p2529_p11 = scmp.ne.s32.totalorder %s2060_s21, %s2528_s8 }
 0x3ec   : > { %p2530_p12 = pnand %p2529_p11, %p2680_p5 }
 0x3ee   : > { %p2531_p13 = pneg %p2530_p12 }
 0x3f0   : > { %v863_v6 = vpop.xlane.xlu0 %862 }
 0x3f1   : > { %v885_v8 = vsub.f32 %v2809_v10, %v863_v6 }
 0x3f2   : > { %418 = vrot.lane.b32.xlu0 %v2744_v32, %s2592_s29  ;;  %s2046_s29 = scalar_lea.sflag [#allocation3], %s267_s16 }
 0x3f3   : > { %v893_v9 = vmul.f32 1.442695, %v885_v8 }
 0x3f5   : > { %2492 = vpow2.f32 %v893_v9 }
 0x402   : > { %v2848_v12 = vpop.eup %2492 }
 0x403   : > { %v909_v7 = vsel %vm450_vm2, %v2848_v12, 0.0 }
 0x40d   : > { %910 = vadd.xlane.f32.xlu1 %v909_v7 }
 0x41e   : > { %427 = vrot.lane.b32.xlu1 %v2744_v32, %s2594_s9  ;;  %s2532_s9 = sshll.u32 %s2601_s28, 4  ;;  %s2533_s9 = int_to_ptr.vmem [resolvable:$false] %s2532_s9 }
 0x41f   : > { %p2535_p0 = scmp.lt.s32.totalorder %s2060_s21, %s2533_s9 }
 0x44d   : > { %v866_v13 = vpop.xlane.xlu1 %865 }
 0x44e   : > { %v886_v14 = vsub.f32 %v2815_v18, %v866_v13 }
 0x450   : > { %v895_v15 = vmul.f32 1.442695, %v886_v14 }
 0x451   : > { %v869_v16 = vpop.xlane.xlu0 %868 }
 0x452   : > { %2494 = vpow2.f32 %v895_v15  ;;  %v887_v17 = vsub.f32 %v855_v29, %v869_v16 }
 0x454   : > { %v897_v19 = vmul.f32 1.442695, %v887_v17 }
 0x455   : > { %v872_v26 = vpop.xlane.xlu0 %871 }
 0x456   : > { %2496 = vpow2.f32 %v897_v19  ;;  %v888_v49 = vsub.f32 %v2824_v38, %v872_v26 }
 0x458   : > { %v899_v50 = vmul.f32 1.442695, %v888_v49 }
 0x459   : > { %v875_v10 = vpop.xlane.xlu1 %874 }
 0x45a   : > { %v889_v24 = vsub.f32 %v857_v45, %v875_v10 }
 0x45c   : > { %v901_v25 = vmul.f32 1.442695, %v889_v24 }
 0x45d   : > { %v878_v30 = vpop.xlane.xlu0 %877 }
 0x45e   : > { %2498 = vpow2.f32 %v901_v25  ;;  %v890_v51 = vsub.f32 %v2833_v52, %v878_v30 }
 0x45f   : > { %v2855_v27 = vpop.eup %2494 }
 0x460   : > { %v912_v28 = vsel %vm450_vm2, %v2855_v27, 0.0  ;;  %v903_v53 = vmul.f32 1.442695, %v890_v51  ;;  %v1343_v51 = vld [vmem:[%s3141_s4 + $0x4] sm:$0xf] }
 0x461   : > { %913 = vadd.xlane.f32.xlu0 %v912_v28  ;;  %v881_v31 = vpop.xlane.xlu1 %880  ;;  %v1342_v28 = vld [vmem:[%s3141_s4] sm:$0xf] }
 0x462   : > { %v891_v18 = vsub.f32 %v859_v59, %v881_v31 }
 0x463   : > { %v2859_v33 = vpop.eup %2496 }
 0x464   : > { %v905_v34 = vmul.f32 1.442695, %v891_v18  ;;  %v915_v29 = vsel %vm450_vm2, %v2859_v33, 0.0  ;;  %v1354_v18 = vsel %vm968_vm3, %v1342_v28, 0 }
 0x465   : > { %v884_v36 = vpop.xlane.xlu0 %883  ;;  %916 = vadd.xlane.f32.xlu1 %v915_v29  ;;  %v422_v55 = vpop.permute.xlu1 %421 }
 0x466   : > { %2500 = vpow2.f32 %v905_v34  ;;  %v892_v37 = vsub.f32 %v860_v2, %v884_v36  ;;  %v959_v59 = vpack.c.bf16 %v422_v55, %v422_v55 }
 0x468   : > { %v907_v39 = vmul.f32 1.442695, %v892_v37  ;;  %v1062_v62 = vsel %vm968_vm3, %v959_v59, 0  ;;  %v1345_v59 = vld [vmem:[%s3141_s4 + $0xc] sm:$0xf] }
 0x469   : > { %v419_v40 = vpop.permute.xlu0 %418 }
 0x46a   : > { %2502 = vpow2.f32 %v907_v39  ;;  %v958_v41 = vpack.c.bf16 %v419_v40, %v419_v40 }
 0x46b   : > { %v2863_v42 = vpop.eup %2498  ;;  %2504 = vpow2.f32 %v899_v50 }
 0x46c   : > { %v1016_v43 = vsel %vm968_vm3, %v958_v41, 0  ;;  %v921_v44 = vsel %vm450_vm2, %v2863_v42, 0.0  ;;  %2506 = vpow2.f32 %v903_v53 }
 0x46d   : > { %2311 = vmatpush3.bf16.msra.mxu1 %v1016_v43  ;;  %922 = vadd.xlane.f32.xlu1 %v921_v44 }
 0x46e   : > { %2322 = vmatprep.subr.bf16.mxu1 %v2595_v35 }
 0x473   : > { %v2869_v45 = vpop.eup %2500 }
 0x474   : > { %v927_v46 = vsel %vm450_vm2, %v2869_v45, 0.0 }
 0x475   : > { %928 = vadd.xlane.f32.xlu1 %v927_v46 }
 0x477   : > { %v2873_v47 = vpop.eup %2502  ;;  %424 = vrot.lane.b32.xlu0 %v2744_v32, %s2591_s23 }
 0x478   : > { %v930_v48 = vsel %vm450_vm2, %v2873_v47, 0.0  ;;  %v2883_v54 = vpop.eup %2504 }
 0x479   : > { %931 = vadd.xlane.f32.xlu1 %v930_v48  ;;  %v918_v56 = vsel %vm450_vm2, %v2883_v54, 0.0  ;;  %v2887_v57 = vpop.eup %2506 }
 0x47a   : > { %v924_v38 = vsel %vm450_vm2, %v2887_v57, 0.0 }
 0x48a   : > { %433 = vrot.lane.b32.xlu1 %v2744_v32, %s2598_s14 }
 0x496   : > { %919 = vadd.xlane.f32.xlu0 %v918_v56  ;;  %v911_v58 = vpop.xlane.xlu1 %910 }
 0x497   : > { %2508 = vrcp.f32 %v911_v58 }
 0x49a   : > { %925 = vadd.xlane.f32.xlu0 %v924_v38  ;;  %v428_v63 = vpop.permute.xlu1 %427 }
 0x4a4   : > { %v2509_v52 = vpop.eup %2508 }
 0x4a5   : > { %v941_v60 = vmul.f32 %v2509_v52, %v2848_v12  ;;  %v961_v12 = vpack.c.bf16 %v428_v63, %v428_v63 }
 0x4a7   : > { %v949_v61 = vpack.c.bf16 %v941_v60, %v941_v60  ;;  %v1154_v15 = vsel %vm968_vm3, %v961_v12, 0  ;;  %v1348_v12 = vld [vmem:[%s3141_s4 + $0x18] sm:$0xf] }
 0x4a9   : > { %2307 = vmatmul.mubr.msk.bf16.vlgmr.msra.gmra.mxu0 %vm450_vm2, %v949_v61 }
 0x4aa   : > { %2317 = vmatpush3.bf16.msra.mxu0 %v1062_v62  ;;  %2318 = vmatprep.mubr.msk.bf16.mxu0 %vm2597_vm1, %v2595_v35  ;;  %v1492_v62 = vsel %vm968_vm3, %v1345_v59, 0 }
 0x4ab   : > { %2328 = vmatprep.subr.bf16.mxu0 %v2595_v35 }
 0x4b0   : > { %430 = vrot.lane.b32.xlu0 %v2744_v32, %s2596_s13  ;;  %s2534_s13 = scalar_lea.vmem %s2533_s9, 256 }
 0x4b1   : > { %p2536_p1 = scmp.lt.s32.totalorder %s2534_s13, %s2528_s8 }
 0x4b3   : > { %p2537_p2 = por %p2536_p1, %p2535_p0 }
 0x4b4   : > { %436 = vrot.lane.b32.xlu0 %v2744_v32, %s2599_s15 }
 0x4b5   : > { %p2538_p3 = pnand %p2537_p2, %p2531_p13 }
 0x4ea   : > { %v914_v0 = vpop.xlane.xlu0 %913 }
 0x4eb   : > { %2510 = vrcp.f32 %v914_v0  ;;  %v1346_v0 = vld [vmem:[%s3141_s4 + $0x10] sm:$0xf] }
 0x4ee   : > { %v917_v1 = vpop.xlane.xlu1 %916  ;;  %v425_v2 = vpop.permute.xlu0 %424 }
 0x4ef   : > { %2512 = vrcp.f32 %v917_v1  ;;  %v960_v5 = vpack.c.bf16 %v425_v2, %v425_v2 }
 0x4f1   : > { %v1108_v7 = vsel %vm968_vm3, %v960_v5, 0 }
 0x4f6   : > { %v923_v3 = vpop.xlane.xlu1 %922 }
 0x4f7   : > { %2514 = vrcp.f32 %v923_v3 }
 0x4f8   : > { %v2511_v4 = vpop.eup %2510 }
 0x4f9   : > { %v942_v6 = vmul.f32 %v2511_v4, %v2855_v27  ;;  %v1538_v4 = vsel %vm968_vm3, %v1346_v0, 0 }
 0x4fb   : > { %v950_v8 = vpack.c.bf16 %v942_v6, %v942_v6 }
 0x4fc   : > { %v2513_v9 = vpop.eup %2512 }
 0x4fd   : > { %2313 = vmatmul.mubr.msk.bf16.vlgmr.msra.gmra.mxu1 %vm450_vm2, %v950_v8  ;;  %v943_v32 = vmul.f32 %v2513_v9, %v2859_v33 }
 0x4fe   : > { %2323 = vmatpush3.bf16.msra.mxu1 %v1108_v7  ;;  %v929_v13 = vpop.xlane.xlu1 %928  ;;  %2324 = vmatprep.mubr.msk.bf16.mxu1 %vm2597_vm1, %v2595_v35 }
 0x4ff   : > { %2516 = vrcp.f32 %v929_v13  ;;  %v951_v14 = vpack.c.bf16 %v943_v32, %v943_v32  ;;  %2334 = vmatprep.subr.bf16.mxu1 %v2595_v35  ;;  %v1630_v13 = vsel %vm968_vm3, %v1348_v12, 0 }
 0x501   : > { %2319 = vmatmul.mubr.msk.bf16.vlgmr.msra.gmra.mxu0 %vm450_vm2, %v951_v14 }
 0x502   : > { %2329 = vmatpush3.bf16.msra.mxu0 %v1154_v15  ;;  %v932_v16 = vpop.xlane.xlu1 %931  ;;  %2330 = vmatprep.mubr.msk.bf16.mxu0 %vm2597_vm1, %v2595_v35 }
 0x503   : > { %2340 = vmatprep.subr.bf16.mxu0 %v2595_v35 }
 0x504   : > { %v2515_v17 = vpop.eup %2514 }
 0x505   : > { %v945_v19 = vmul.f32 %v2515_v17, %v2863_v42 }
 0x506   : > { %v434_v10 = vpop.permute.xlu1 %433 }
 0x507   : > { %v963_v24 = vpack.c.bf16 %v434_v10, %v434_v10  ;;  %v953_v25 = vpack.c.bf16 %v945_v19, %v945_v19 }
 0x509   : > { %v1246_v26 = vsel %vm968_vm3, %v963_v24, 0  ;;  %2331 = vmatmul.mubr.msk.bf16.vlgmr.msra.gmra.mxu0 %vm450_vm2, %v953_v25 }
 0x50a   : > { %2341 = vmatpush3.bf16.msra.mxu0 %v1246_v26  ;;  %2342 = vmatprep.mubr.msk.bf16.mxu0 %vm2597_vm1, %v2595_v35  ;;  %v1347_v26 = vld [vmem:[%s3141_s4 + $0x14] sm:$0xf] }
 0x50b   : > { %2352 = vmatprep.subr.bf16.mxu0 %v2595_v35 }
 0x50c   : > { %v2517_v27 = vpop.eup %2516 }
 0x50d   : > { %v947_v30 = vmul.f32 %v2517_v27, %v2869_v45 }
 0x50f   : > { %v955_v31 = vpack.c.bf16 %v947_v30, %v947_v30  ;;  %v1584_v30 = vsel %vm968_vm3, %v1347_v26, 0 }
 0x511   : > { %2343 = vmatmul.mubr.msk.bf16.vlgmr.msra.gmra.mxu0 %vm450_vm2, %v955_v31 }
 0x512   : > { %2353 = vmatpush3.bf16.msra.mxu0 %v1354_v18  ;;  %2354 = vmatprep.mubr.msk.bf16.mxu0 %vm2597_vm1, %v2595_v35 }
 0x513   : > { %2364 = vmatprep.subr.bf16.mxu0 %v2595_v35 }
 0x51f   : > { %v920_v33 = vpop.xlane.xlu0 %919 }
 0x520   : > { %2518 = vrcp.f32 %v920_v33  ;;  %v1349_v33 = vld [vmem:[%s3141_s4 + $0x1c] sm:$0xf] }
 0x523   : > { %v926_v34 = vpop.xlane.xlu0 %925 }
 0x524   : > { %2520 = vrcp.f32 %v926_v34 }
 0x525   : > { %2522 = vrcp.f32 %v932_v16 }
 0x527   : > { %v431_v29 = vpop.permute.xlu0 %430 }
 0x528   : > { %v962_v37 = vpack.c.bf16 %v431_v29, %v431_v29 }
 0x52a   : > { %v1200_v42 = vsel %vm968_vm3, %v962_v37, 0 }
 0x52b   : > { %v437_v43 = vpop.permute.xlu0 %436 }
 0x52c   : > { %v964_v45 = vpack.c.bf16 %v437_v43, %v437_v43 }
 0x52d   : > { %v2519_v36 = vpop.eup %2518 }
 0x52e   : > { %v944_v39 = vmul.f32 %v2519_v36, %v2883_v54  ;;  %v1292_v49 = vsel %vm968_vm3, %v964_v45, 0  ;;  %v1400_v54 = vsel %vm968_vm3, %v1343_v51, 0  ;;  %v1676_v36 = vsel %vm968_vm3, %v1349_v33, 0 }
 0x530   : > { %v952_v40 = vpack.c.bf16 %v944_v39, %v944_v39 }
 0x531   : > { %v2521_v41 = vpop.eup %2520 }
 0x532   : > { %2325 = vmatmul.mubr.msk.bf16.vlgmr.msra.gmra.mxu1 %vm450_vm2, %v952_v40  ;;  %v946_v44 = vmul.f32 %v2521_v41, %v2887_v57  ;;  %v2523_v48 = vpop.eup %2522 }
 0x533   : > { %2335 = vmatpush3.bf16.msra.mxu1 %v1200_v42  ;;  %2336 = vmatprep.mubr.msk.bf16.mxu1 %vm2597_vm1, %v2595_v35  ;;  %v948_v50 = vmul.f32 %v2523_v48, %v2873_v47  ;;  %v1344_v47 = vld [vmem:[%s3141_s4 + $0x8] sm:$0xf] }
 0x534   : > { %2346 = vmatprep.subr.bf16.mxu1 %v2595_v35  ;;  %v954_v46 = vpack.c.bf16 %v946_v44, %v946_v44  ;;  %v1446_v57 = vsel %vm968_vm3, %v1344_v47, 0 }
 0x535   : > { %v956_v53 = vpack.c.bf16 %v948_v50, %v948_v50 }
 0x53a   : > { %2337 = vmatmul.mubr.msk.bf16.vlgmr.msra.gmra.mxu1 %vm450_vm2, %v954_v46 }
 0x53b   : > { %2347 = vmatpush3.bf16.msra.mxu1 %v1292_v49  ;;  %2348 = vmatprep.mubr.msk.bf16.mxu1 %vm2597_vm1, %v2595_v35 }
 0x53c   : > { %2358 = vmatprep.subr.bf16.mxu1 %v2595_v35 }
 0x542   : > { %2349 = vmatmul.mubr.msk.bf16.vlgmr.msra.gmra.mxu1 %vm450_vm2, %v956_v53 }
 0x543   : > { %2359 = vmatpush3.bf16.msra.mxu1 %v1400_v54  ;;  %2360 = vmatprep.mubr.msk.bf16.mxu1 %vm2597_vm1, %v2595_v35 }
 0x544   : > { %2370 = vmatprep.subr.bf16.mxu1 %v2595_v35 }
 0x569   : > { %v1006_v55 = vpop.f32.mrf.mxu0 }
 0x56a   : > { %v1334_v56 = vpack.c.bf16 %v1006_v55, %v1006_v55 }
 0x56b   : > { %v2308_v58 = vpop.f32.mrf.mxu0 }
 0x56c   : > { %2355 = vmatmul.mubr.msk.bf16.vlgmr.msra.gmra.mxu0 %vm450_vm2, %v1334_v56 }
 0x56d   : > { %v1009_v38 = vpop.f32.mrf.mxu0  ;;  %2365 = vmatpush3.bf16.msra.mxu0 %v1446_v57  ;;  %2366 = vmatprep.mubr.msk.bf16.mxu0 %vm2597_vm1, %v2595_v35 }
 0x56e   : > { %2376 = vmatprep.subr.bf16.mxu0 %v2595_v35 }
 0x56f   : > { %v2309_v52 = vpop.f32.mrf.mxu0 }
 0x5bd   : > { %v1052_v60 = vpop.f32.mrf.mxu1 }
 0x5be   : > { %v1335_v61 = vpack.c.bf16 %v1052_v60, %v1052_v60 }
 0x5bf   : > { %v2314_v63 = vpop.f32.mrf.mxu1 }
 0x5c0   : > { %2361 = vmatmul.mubr.msk.bf16.vlgmr.msra.gmra.mxu1 %vm450_vm2, %v1335_v61 }
 0x5c1   : > { %v1055_v1 = vpop.f32.mrf.mxu1  ;;  %v1098_v2 = vpop.f32.mrf.mxu0  ;;  %2371 = vmatpush3.bf16.msra.mxu1 %v1492_v62  ;;  %2372 = vmatprep.mubr.msk.bf16.mxu1 %vm2597_vm1, %v2595_v35 }
 0x5c2   : > { %v1336_v3 = vpack.c.bf16 %v1098_v2, %v1098_v2  ;;  %2382 = vmatprep.subr.bf16.mxu1 %v2595_v35 }
 0x5c3   : > { %v2315_v5 = vpop.f32.mrf.mxu1  ;;  %v2320_v6 = vpop.f32.mrf.mxu0 }
 0x5c4   : > { %2367 = vmatmul.mubr.msk.bf16.vlgmr.msra.gmra.mxu0 %vm450_vm2, %v1336_v3 }
 0x5c5   : > { %v1101_v8 = vpop.f32.mrf.mxu0  ;;  %2377 = vmatpush3.bf16.msra.mxu0 %v1538_v4  ;;  %2378 = vmatprep.mubr.msk.bf16.mxu0 %vm2597_vm1, %v2595_v35 }
 0x5c6   : > { %2388 = vmatprep.subr.bf16.mxu0 %v2595_v35 }
 0x5c7   : > { %v2321_v9 = vpop.f32.mrf.mxu0 }
 0x5c9   : > { %v1190_v7 = vpop.f32.mrf.mxu0 }
 0x5ca   : > { %v1338_v32 = vpack.c.bf16 %v1190_v7, %v1190_v7 }
 0x5cb   : > { %v2332_v14 = vpop.f32.mrf.mxu0 }
 0x5cc   : > { %2379 = vmatmul.mubr.msk.bf16.vlgmr.msra.gmra.mxu0 %vm450_vm2, %v1338_v32 }
 0x5cd   : > { %v1193_v15 = vpop.f32.mrf.mxu0  ;;  %2389 = vmatpush3.bf16.msra.mxu0 %v1630_v13  ;;  %2390 = vmatprep.mubr.msk.bf16.mxu0 %vm2597_vm1, %v2595_v35 }
 0x5cf   : > { %v2333_v16 = vpop.f32.mrf.mxu0 }
 0x5d1   : > { %v1282_v17 = vpop.f32.mrf.mxu0 }
 0x5d2   : > { %v1340_v19 = vpack.c.bf16 %v1282_v17, %v1282_v17 }
 0x5d3   : > { %v2344_v10 = vpop.f32.mrf.mxu0 }
 0x5d4   : > { %2391 = vmatmul.mubr.msk.bf16.vlgmr.msra.gmra.mxu0 %vm450_vm2, %v1340_v19  ;;  %v1735_v10 = vsub.s32 4, %v2726_v20 }
 0x5d5   : > { %v1285_v24 = vpop.f32.mrf.mxu0  ;;  %1858 = vmatprep.mubr.bf16.mxu0 %v2590_v11 }
 0x5d7   : > { %v2345_v25 = vpop.f32.mrf.mxu0 }
 0x5f2   : > { %v1144_v27 = vpop.f32.mrf.mxu1 }
 0x5f3   : > { %v1337_v28 = vpack.c.bf16 %v1144_v27, %v1144_v27 }
 0x5f4   : > { %v2326_v31 = vpop.f32.mrf.mxu1 }
 0x5f5   : > { %2373 = vmatmul.mubr.msk.bf16.vlgmr.msra.gmra.mxu1 %vm450_vm2, %v1337_v28  ;;  %v1736_v28 = vrot.slane %v2732_v22, %v1735_v10 }
 0x5f6   : > { %2383 = vmatpush3.bf16.msra.mxu1 %v1584_v30  ;;  %v1147_v18 = vpop.f32.mrf.mxu1  ;;  %2384 = vmatprep.mubr.msk.bf16.mxu1 %vm2597_vm1, %v2595_v35 }
 0x5f7   : > { %2394 = vmatprep.subr.bf16.mxu1 %v2595_v35 }
 0x5f8   : > { %v2327_v11 = vpop.f32.mrf.mxu1 }
 0x5fa   : > { %v1236_v34 = vpop.f32.mrf.mxu1 }
 0x5fb   : > { %v1339_v29 = vpack.c.bf16 %v1236_v34, %v1236_v34 }
 0x5fc   : > { %v2338_v37 = vpop.f32.mrf.mxu1 }
 0x5fd   : > { %2385 = vmatmul.mubr.msk.bf16.vlgmr.msra.gmra.mxu1 %vm450_vm2, %v1339_v29  ;;  %v2526_v29 = vld [vmem:[%s2695_s17] sm:$0xff]  ;;  %s2057_s17 = scalar_lea.hbm %s3144_s7, %s2183_s19 }
 0x5fe   : > { %2395 = vmatpush3.bf16.msra.mxu1 %v1676_v36  ;;  %v1239_v39 = vpop.f32.mrf.mxu1  ;;  %2396 = vmatprep.mubr.msk.bf16.mxu1 %vm2597_vm1, %v2595_v35 }
 0x600   : > { %v2339_v40 = vpop.f32.mrf.mxu1 }
 0x602   : > { %v1328_v41 = vpop.f32.mrf.mxu1 }
 0x603   : > { %v1341_v42 = vpack.c.bf16 %v1328_v41, %v1328_v41 }
 0x604   : > { %v2350_v43 = vpop.f32.mrf.mxu1 }
 0x605   : > { %2397 = vmatmul.mubr.msk.bf16.vlgmr.msra.gmra.mxu1 %vm450_vm2, %v1341_v42  ;;  %v2464_v43 = vld [vmem:[%s3142_s5 + $0x34] ss:$8 sps:$4 sm:$0xff]  }
 0x606   : > { %v1331_v44 = vpop.f32.mrf.mxu1  ;;  %1834 = vmatprep.subr.bf16.mxu0 %v2464_v43 }
 0x607   : > { %v2462_v44 = vld [vmem:[%s3142_s5 + $0x30] ss:$8 sps:$4 sm:$0xff]  }
 0x608   : > { %v2351_v45 = vpop.f32.mrf.mxu1  ;;  %1835 = vmatpush1.bf16.msra.mxu0 %v2462_v44 }
 0x609   : > { %v2467_v45 = vld [vmem:[%s3142_s5 + $0x24] ss:$8 sps:$4 sm:$0xff]  }
 0x60a   : > { %1836 = vmatprep.subr.bf16.mxu0 %v2467_v45 }
 0x62c   : > { %v1390_v46 = vpop.f32.mrf.mxu0 }
 0x62d   : > { %v1718_v2 = vsel %vm277_vm0, %v1390_v46, 0.0  ;;  %v2465_v46 = vld [vmem:[%s3142_s5 + $0x20] ss:$8 sps:$4 sm:$0xff]  }
 0x62e   : > { %v2356_v48 = vpop.f32.mrf.mxu0  ;;  %1837 = vmatpush1.bf16.msra.mxu0 %v2465_v46 }
 0x62f   : > { %v2470_v48 = vld [vmem:[%s3142_s5 + $0x14] ss:$8 sps:$4 sm:$0xff]  }
 0x630   : > { %v1393_v49 = vpop.f32.mrf.mxu0  ;;  %1838 = vmatprep.subr.bf16.mxu0 %v2470_v48 }
 0x631   : > { %v2468_v49 = vld [vmem:[%s3142_s5 + $0x10] ss:$8 sps:$4 sm:$0xff]  }
 0x632   : > { %v2357_v50 = vpop.f32.mrf.mxu0  ;;  %1839 = vmatpush1.bf16.msra.mxu0 %v2468_v49 }
 0x633   : > { %v2473_v50 = vld [vmem:[%s3142_s5 + $0x4] ss:$8 sps:$4 sm:$0xff]  }
 0x634   : > { %1840 = vmatprep.subr.bf16.mxu0 %v2473_v50 }
 0x680   : > { %v1436_v51 = vpop.f32.mrf.mxu1 }
 0x681   : > { %v1719_v0 = vsel %vm277_vm0, %v1436_v51, 0.0  ;;  %v2471_v51 = vld [vmem:[%s3142_s5] ss:$8 sps:$4 sm:$0xff]  }
 0x682   : > { %v2362_v53 = vpop.f32.mrf.mxu1  ;;  %v1720_v4 = vadd.f32 %v1719_v0, %v1718_v2  ;;  %1841 = vmatpush1.bf16.msra.mxu0 %v2471_v51  ;;  %v1754_v0 = vsub.s32 2, %v2726_v20  ;;  %v2527_v2 = vld [vmem:[%s3138_s1] sm:$0x3f] }
 0x683   : > { %v2474_v53 = vld [vmem:[%s3143_s6 + $0x78] sm:$0xff]  }
 0x684   : > { %v1439_v54 = vpop.f32.mrf.mxu1  ;;  %v1482_v47 = vpop.f32.mrf.mxu0  ;;  %2234 = vmatprep.subr.bf16.mxu1 %v2474_v53 }
 0x685   : > { %v1721_v3 = vsel %vm277_vm0, %v1482_v47, 0.0  ;;  %v2475_v54 = vld [vmem:[%s3143_s6 + $0x38] sm:$0xff]   ;;  %v2476_v47 = vld [vmem:[%s3143_s6 + $0x70] sm:$0xff]  }
 0x686   : > { %v2363_v55 = vpop.f32.mrf.mxu1  ;;  %v2368_v56 = vpop.f32.mrf.mxu0  ;;  %v1722_v8 = vadd.f32 %v1721_v3, %v1720_v4  ;;  %2235 = vmatpush3.bf16.msra.mxu1 %v2475_v54  ;;  %v1755_v3 = vrot.slane %v2527_v2, %v1754_v0 }
 0x687   : > { %v2477_v55 = vld [vmem:[%s3143_s6 + $0x30] sm:$0xff]   ;;  %2236 = vmatprep.subr.bf16.mxu1 %v2476_v47  ;;  %v2478_v56 = vld [vmem:[%s3143_s6 + $0x68] sm:$0xff]  }
 0x688   : > { %v1485_v57 = vpop.f32.mrf.mxu0 }
 0x689   : > { %v2479_v57 = vld [vmem:[%s3143_s6 + $0x28] sm:$0xff]  }
 0x68a   : > { %v2369_v35 = vpop.f32.mrf.mxu0  ;;  %2237 = vmatpush3.bf16.msra.mxu1 %v2477_v55 }
 0x68b   : > { %2238 = vmatprep.subr.bf16.mxu1 %v2478_v56  ;;  %v2480_v35 = vld [vmem:[%s3143_s6 + $0x60] sm:$0xff]  }
 0x68c   : > { %v1574_v58 = vpop.f32.mrf.mxu0 }
 0x68d   : > { %v1725_v13 = vsel %vm277_vm0, %v1574_v58, 0.0  ;;  %v2481_v58 = vld [vmem:[%s3143_s6 + $0x20] sm:$0xff]  }
 0x68e   : > { %v2380_v38 = vpop.f32.mrf.mxu0  ;;  %2239 = vmatpush3.bf16.msra.mxu1 %v2479_v57 }
 0x68f   : > { %2240 = vmatprep.subr.bf16.mxu1 %v2480_v35  ;;  %v2482_v38 = vld [vmem:[%s3143_s6 + $0x58] sm:$0xff]  }
 0x690   : > { %v1577_v52 = vpop.f32.mrf.mxu0 }
 0x691   : > { %v2483_v52 = vld [vmem:[%s3143_s6 + $0x18] sm:$0xff]  }
 0x692   : > { %v2381_v59 = vpop.f32.mrf.mxu0  ;;  %2241 = vmatpush3.bf16.msra.mxu1 %v2481_v58 }
 0x693   : > { %2242 = vmatprep.subr.bf16.mxu1 %v2482_v38  ;;  %v2484_v59 = vld [vmem:[%s3143_s6 + $0x50] sm:$0xff]  }
 0x694   : > { %v1666_v60 = vpop.f32.mrf.mxu0 }
 0x695   : > { %v1729_v25 = vsel %vm277_vm0, %v1666_v60, 0.0  ;;  %v2485_v60 = vld [vmem:[%s3143_s6 + $0x10] sm:$0xff]  }
 0x696   : > { %v2392_v61 = vpop.f32.mrf.mxu0  ;;  %2243 = vmatpush3.bf16.msra.mxu1 %v2483_v52 }
 0x697   : > { %2244 = vmatprep.subr.bf16.mxu1 %v2484_v59 }
 0x698   : > { %v1669_v62 = vpop.f32.mrf.mxu0 }
 0x69a   : > { %v2393_v63 = vpop.f32.mrf.mxu0  ;;  %2245 = vmatpush3.bf16.msra.mxu1 %v2485_v60 }
 0x6b5   : > { %v1528_v1 = vpop.f32.mrf.mxu1 }
 0x6b6   : > { %v1723_v6 = vsel %vm277_vm0, %v1528_v1, 0.0  ;;  %v1759_v1 = vsub.s32 3, %v2726_v20 }
 0x6b7   : > { %v2374_v5 = vpop.f32.mrf.mxu1  ;;  %v1724_v12 = vadd.f32 %v1723_v6, %v1722_v8 }
 0x6b8   : > { %v1760_v6 = vrot.slane %v2527_v2, %v1759_v1 }
 0x6b9   : > { %v1531_v9 = vpop.f32.mrf.mxu1  ;;  %v1726_v15 = vadd.f32 %v1725_v13, %v1724_v12  ;;  %v2488_v13 = vld [vmem:[%s3143_s6 + $0x40] sm:$0xff]  }
 0x6bb   : > { %v2375_v7 = vpop.f32.mrf.mxu1 }
 0x6bc   : > { %v2486_v7 = vld [vmem:[%s3143_s6 + $0x48] sm:$0xff]  }
 0x6bd   : > { %v1620_v32 = vpop.f32.mrf.mxu1  ;;  %2246 = vmatprep.subr.bf16.mxu1 %v2486_v7 }
 0x6be   : > { %v1727_v14 = vsel %vm277_vm0, %v1620_v32, 0.0  ;;  %v2487_v32 = vld [vmem:[%s3143_s6 + $0x8] sm:$0xff]  }
 0x6bf   : > { %v2386_v16 = vpop.f32.mrf.mxu1  ;;  %v1728_v17 = vadd.f32 %v1727_v14, %v1726_v15  ;;  %2247 = vmatpush3.bf16.msra.mxu1 %v2487_v32  ;;  %v2489_v14 = vld [vmem:[%s3143_s6] sm:$0xff]  }
 0x6c0   : > { %2248 = vmatprep.subr.bf16.mxu1 %v2488_v13  ;;  %v1771_v15 = vld [vmem:[%s3139_s2] sm:$0x3] }
 0x6c1   : > { %v1623_v19 = vpop.f32.mrf.mxu1  ;;  %v1730_v27 = vadd.f32 %v1729_v25, %v1728_v17  ;;  %v1776_v16 = vrot.slane %v1771_v15, %v294_v21  ;;  %v1780_v17 = vrot.slane %v1771_v15, %v299_v23 }
 0x6c3   : > { %v2387_v24 = vpop.f32.mrf.mxu1  ;;  %2249 = vmatpush3.bf16.msra.mxu1 %v2489_v14 }
 0x6c5   : > { %v1712_v26 = vpop.f32.mrf.mxu1 }
 0x6c6   : > { %v1731_v30 = vsel %vm277_vm0, %v1712_v26, 0.0 }
 0x6c7   : > { %v1732_v31 = vadd.f32 %v1731_v30, %v1730_v27  ;;  %v2398_v18 = vpop.f32.mrf.mxu1 }
 0x6c9   : > { %v1737_v11 = vadd.f32 %v1736_v28, %v1732_v31  ;;  %v1715_v33 = vpop.f32.mrf.mxu1 }
 0x6cb   : > { %v2399_v34 = vpop.f32.mrf.mxu1  ;;  %v3009_v36 = vadd.f32 %v2526_v29, %v1737_v11  ;;  %v1905_v11 = vsub.s32 5, %v2726_v20 }
 0x6cd   : > { %v1739_v37 = vsel %vm277_vm0, %v3009_v36, 0.0  ;;  %v1906_v33 = vrot.slane %v2527_v2, %v1905_v11 }
 0x6ce   : > { %1740 = vadd.xlane.f32.xlu1 %v1739_v37 }
 0x757   : > { %v1741_v39 = vpop.xlane.xlu1 %1740 }
 0x758   : > { %v1742_v40 = vmul.f32 0.015625, %v1741_v39 }
 0x75a   : > { %v1743_v41 = vsub.f32 %v3009_v36, %v1742_v40 }
 0x75c   : > { %v1744_v42 = vmul.f32 %v1743_v41, %v1743_v41 }
 0x75e   : > { %v1745_v22 = vsel %vm277_vm0, %v1744_v42, 0.0 }
 0x75f   : > { %1746 = vadd.xlane.f32.xlu0 %v1745_v22 }
 0x7e8   : > { %v1747_v61 = vpop.xlane.xlu0 %1746 }
 0x7e9   : > { %v1748_v62 = vmul.f32 0.015625, %v1747_v61 }
 0x7eb   : > { %v1749_v63 = vadd.f32 1e-05, %v1748_v62 }
 0x7ed   : > { %2524 = vrsqrt.f32 %v1749_v63 }
 0x7fa   : > { %v2525_v4 = vpop.eup %2524 }
 0x7fb   : > { %v1751_v5 = vmul.f32 %v2525_v4, %v1743_v41 }
 0x7fd   : > { %v1756_v8 = vmul.f32 %v1755_v3, %v1751_v5 }
 0x7ff   : > { %v1761_v9 = vadd.f32 %v1760_v6, %v1756_v8 }
 0x801   : > { %v1762_v12 = vpack.c.bf16 %v1761_v9, %v1761_v9 }
 0x803   : > { %2165 = vmatmul.mubr.msk.bf16.vlgmr.msra.gmra.mxu0 %vm277_vm0, %v1762_v12 }
 0x8c3   : > { %v1860_v19 = vpop.f32.mrf.mxu0 }
 0x8c4   : > { %v1861_v10 = vadd.f32 %v1860_v19, %v1776_v16 }
 0x8c5   : > { %v1862_v24 = vpop.f32.mrf.mxu0 }
 0x8c6   : > { %v1863_v25 = vadd.f32 %v1862_v24, %v1780_v17  ;;  %v1867_v26 = vmax.f32 %v1861_v10, 0.0 }
 0x8c7   : > { %v1864_v27 = vpop.f32.mrf.mxu0 }
 0x8c8   : > { %v1868_v28 = vmax.f32 %v1863_v25, 0.0  ;;  %v1869_v18 = vpack.c.bf16 %v1867_v26, %v1867_v26 }
 0x8c9   : > { %v1865_v30 = vpop.f32.mrf.mxu0 }
 0x8ca   : > { %v1870_v31 = vpack.c.bf16 %v1868_v28, %v1868_v28 }
 0x8cc   : > { %2035 = vmatprep.mubr.bf16.mxu1 %v1870_v31 }
 0x8cd   : > { %2036 = vmatmul.mubr.bf16.vlgmr.msra.gmra.mxu1 %v1869_v18 }
 0x98d   : > { %v2250_v21 = vpop.f32.mrf.mxu1 }
 0x98f   : > { %v2251_v23 = vpop.f32.mrf.mxu1 }
 0x990   : > { %v2252_v34 = vadd.f32 %v2251_v23, %v2250_v21 }
 0x991   : > { %v2253_v29 = vpop.f32.mrf.mxu1 }
 0x992   : > { %v2038_v37 = vadd.f32 %v2252_v34, %v1906_v33 }
 0x993   : > { %v2254_v39 = vpop.f32.mrf.mxu1 }
 0x994   : > { %v2043_v40 = vadd.f32 %v2038_v37, %v3009_v36 }
 0x996   : > { %2044 = vst.msk [vmem:[%s269_s20] sm:$0xff] %vm277_vm0, %v2043_v40 }
 0x997   : > { %2541 = shalt.err (!%p2538_p3)
}
 0x998   : > { %s2542_s14 = scalar_lea.hbm %s2057_s17, 128  ;;  %s2546_s18 = scalar_lea.hbm %s3144_s7, 256 }
 0x999   : > { %p2543_p4 = scmp.ne.s32.totalorder %s2057_s17, %s2542_s14  ;;  %p2547_p9 = scmp.lt.s32.totalorder %s2057_s17, %s3144_s7 }
 0x99a   : > { %p2548_p10 = scmp.lt.s32.totalorder %s2546_s18, %s2542_s14 }
 0x99b   : > { %p2544_p7 = pnand %p2543_p4, %p2680_p5 }
 0x99c   : > { %p2549_p11 = por %p2548_p10, %p2547_p9 }
 0x99d   : > { %p2545_p8 = pneg %p2544_p7 }
 0x99f   : > { %p2550_p12 = pnand %p2549_p11, %p2545_p8 }
 0x9a1   : > { %2553 = shalt.err (!%p2550_p12)
}
 0x9a2   : > { %2400 = dma.vmem_to_hbm [thread:$0]  (%p2680_p5), %s2060_s21, 128, %s2057_s17, %s2046_s29  }
 0x9a3 PF: > { %p2406_p13 = scmp.ge.s32.totalorder %s2588_s27, 2  ;;  %s2071_s22 = sand.u32 1, %s2576_s24  }
 0x9a4   : > { %s2072_s23 = scalar_lea.sflag [#allocation3], %s2071_s22 }
 0x9a5   : > { %p2403_p0 = pnand %p2406_p13, %p2684_p6 }
 0x9a7   : > { %p2404_p1 = pneg %p2403_p0 }
 0x9a9   : > { %2571 = dma.done.wait (%p2404_p1), %s2072_s23, 128  }
 0x9aa   : > { %2573 = vsyncadd (%p2404_p1), %s2072_s23, 4294967168  ;;  %p17_p2 = scmp.ge.s32.totalorder %s2667_s30, 4   ;;  %s3149_s24 = smov %s2580_s25 }
 0x9ab   : > { %s3150_s25 = smov %s2584_s26  ;;  %s3151_s26 = smov %s2678_s10 }
 0x9ac   : > { %s3152_s27 = smov %s2667_s30  ;;  %19 = sbr.rel (!%p17_p2) target bundleno = 3 (0x3), region = 83 }
 0x9b1   :  { %2077 = vsyncpa [#allocation3], 1 }
 0x9b2   :  { %2079 = vsyncpa [#allocation3 + $0x1], 1 }

</bundles_post_ra>
